<compile_context>
chip_gen: v7x
topology: tpu7x:2x2x1
jax: 0.10.0
libtpu: 0.0.40
codegen_flags: <defaults>
</compile_context>

<pallas_src>
import math

import jax
import jax.numpy as jnp
from jax.experimental import pallas as pl
from jax.experimental.pallas import tpu as pltpu

EPS = 1e-5


def lstm_layer_kernel(x_ref, wih_ref, whh_ref, b_ref,
                      gnw_ref, gnb_ref, hnw_ref, hnb_ref,
                      out_ref, hc_ref):
    """Single-shot (grid-less) kernel.

    x_ref   : (B*T, D)  bf16  batch-first input, flattened over (batch, time)
    wih_ref : (D, 4D)   bf16  input->hidden weights, pre-transposed, i/f/o cols pre-scaled 0.5
    whh_ref : (D, 4D)   bf16  hidden->hidden weights, pre-transposed, i/f/o cols pre-scaled 0.5
    b_ref   : (1, 4D)   f32   b_ih + b_hh, i/f/o cols pre-scaled 0.5
    gnw/gnb : (1, T*D)  f32   LayerNorm([dim, seq_len]) affine params (lane-dense)
    hnw/hnb : (1, D)    f32   LayerNorm([seq_len]) affine params
    out_ref : (B, T*D)  f32   normalized LSTM output, lane-dense (row b = out[b].reshape(-1))
    hc_ref  : (B, 2D)   f32   [ LN(h_n) | LN(c_n) ] packed along lanes
    """
    BT, D = x_ref.shape
    B = out_ref.shape[0]
    T = BT // B
    G = 4 * D

    wih = wih_ref[...]                                   # (D, 4D) bf16
    whh = whh_ref[...]                                   # (D, 4D) bf16
    bias = b_ref[...]                                    # (1, 4D) f32

    # Hoisted input projection for all timesteps (bias folded in), accumulated in f32,
    # then a single relayout to a lane-dense (B, T*4D) slab. Per-step slices below are
    # 128-lane-aligned static views (4D == 128) -> zero cost on the serial path.
    xproj = jnp.dot(x_ref[...], wih, preferred_element_type=jnp.float32) + bias   # (B*T, 4D)
    xproj = xproj.reshape(B, T * G)                      # (B, T*4D)

    h = jnp.zeros((B, D), jnp.float32)
    c = jnp.zeros((B, D), jnp.float32)

    # T is small and static -> full unroll; only h @ W_hh sits on the serial chain.
    for t in range(T):
        gates = xproj[:, t * G:(t + 1) * G] + jnp.dot(
            h.astype(whh.dtype), whh, preferred_element_type=jnp.float32)   # (B, 4D) f32
        # One EUP pass: i/f/o pre-activations were pre-scaled by 0.5, so
        # sigmoid(z) == 0.5 * tanh(z/2) + 0.5 is a cheap VPU fixup of the tanh result.
        th = jnp.tanh(gates)                             # full-width EUP op
        sg = 0.5 * th + 0.5                              # full-width VPU op
        i = sg[:, 0:D]
        f = sg[:, D:2 * D]
        g = th[:, 2 * D:3 * D]
        o = sg[:, 3 * D:4 * D]
        c = f * c + i * g
        h = o * jnp.tanh(c)
        # Stage raw h directly in the lane-dense output slab (static lane offset t*D).
        out_ref[:, t * D:(t + 1) * D] = h

    # LayerNorm([dim, seq_len]): per batch row over all T*D entries (single lane reduce).
    y = out_ref[...]                                     # (B, T*D)
    mean = jnp.mean(y, axis=-1, keepdims=True)
    d = y - mean
    var = jnp.mean(d * d, axis=-1, keepdims=True)
    out_ref[...] = d * jax.lax.rsqrt(var + EPS) * gnw_ref[...] + gnb_ref[...]

    # LayerNorm([seq_len]) over final h and c (last dim), packed into one (B, 2D) output.
    hnw = hnw_ref[...]
    hnb = hnb_ref[...]

    def ln_vec(v):                                       # (B, D)
        m = jnp.mean(v, axis=-1, keepdims=True)
        dv = v - m
        s2 = jnp.mean(dv * dv, axis=-1, keepdims=True)
        return dv * jax.lax.rsqrt(s2 + EPS) * hnw + hnb

    hc_ref[:, 0:D] = ln_vec(h)
    hc_ref[:, D:2 * D] = ln_vec(c)


@jax.jit
def lstm_layer_forward(x, params):
    """x: (B, T, D) float32; returns (output (B,T,D), (h (1,B,D), c (1,B,D)))."""
    B, T, D = x.shape
    G = 4 * D

    # PyTorch LSTM gate layout along the 4D axis is [ i | f | g | o ].
    # Pre-scale the i/f/o column blocks of W_ih^T, W_hh^T and the fused bias by 0.5 so the
    # kernel needs a single tanh pass (sigmoid(z) = 0.5*(1 + tanh(z/2))). Scaling by a power
    # of two is exact, also after the bf16 cast.
    col_scale = jnp.concatenate([
        jnp.full((2 * D,), 0.5, jnp.float32),   # i, f
        jnp.ones((D,), jnp.float32),            # g
        jnp.full((D,), 0.5, jnp.float32),       # o
    ]).reshape(1, G)

    wih_t = (params["w_ih"].T.astype(jnp.float32) * col_scale).astype(jnp.bfloat16)  # (D, 4D)
    whh_t = (params["w_hh"].T.astype(jnp.float32) * col_scale).astype(jnp.bfloat16)  # (D, 4D)
    bias = (params["b_ih"] + params["b_hh"]).reshape(1, G).astype(jnp.float32) * col_scale
    gnw2d = params["gnw"].reshape(1, T * D).astype(jnp.float32)
    gnb2d = params["gnb"].reshape(1, T * D).astype(jnp.float32)
    hnw = params["hnw"].reshape(1, D).astype(jnp.float32)
    hnb = params["hnb"].reshape(1, D).astype(jnp.float32)
    x2 = x.reshape(B * T, D).astype(jnp.bfloat16)        # bf16 MXU operand, flattened (B*T, D)

    vmem = pl.BlockSpec(memory_space=pltpu.MemorySpace.VMEM)
    out2d, hc = pl.pallas_call(
        lstm_layer_kernel,
        out_shape=(
            jax.ShapeDtypeStruct((B, T * D), jnp.float32),
            jax.ShapeDtypeStruct((B, 2 * D), jnp.float32),
        ),
        in_specs=[vmem] * 8,
        out_specs=(vmem, vmem),
    )(x2, wih_t, whh_t, bias, gnw2d, gnb2d, hnw, hnb)

    output = out2d.reshape(B, T, D)
    h_fin = hc[:, :D]
    c_fin = hc[:, D:]
    return output, (h_fin[None], c_fin[None])


def reference_forward(x, p, mxu_bf16=False):
    """Pure-JAX reference mirroring PyTorch LSTM_Layer.forward.

    mxu_bf16=True truncates the matmul operands to bf16 (what the kernel feeds the MXU)
    so the comparison isolates methodology differences from dtype differences.
    """
    B, T, D = x.shape
    if mxu_bf16:
        trunc = lambda a: a.astype(jnp.bfloat16).astype(jnp.float32)
    else:
        trunc = lambda a: a
    w_ih_t = trunc(p["w_ih"].T)
    w_hh_t = trunc(p["w_hh"].T)
    h = jnp.zeros((B, D), jnp.float32)
    c = jnp.zeros((B, D), jnp.float32)
    outs = []
    for t in range(T):
        gates = trunc(x[:, t, :]) @ w_ih_t + p["b_ih"] + trunc(h) @ w_hh_t + p["b_hh"]
        i, f, g, o = jnp.split(gates, 4, axis=-1)
        i, f, o = jax.nn.sigmoid(i), jax.nn.sigmoid(f), jax.nn.sigmoid(o)
        g = jnp.tanh(g)
        c = f * c + i * g
        h = o * jnp.tanh(c)
        outs.append(h)
    out = jnp.stack(outs, axis=1)                                   # (B, T, D)
    mean = out.mean(axis=(1, 2), keepdims=True)
    var = ((out - mean) ** 2).mean(axis=(1, 2), keepdims=True)
    out = (out - mean) / jnp.sqrt(var + EPS) * p["gnw"] + p["gnb"]

    def lnv(v):
        m = v.mean(-1, keepdims=True)
        s = ((v - m) ** 2).mean(-1, keepdims=True)
        return (v - m) / jnp.sqrt(s + EPS) * p["hnw"] + p["hnb"]

    return out, (lnv(h)[None], lnv(c)[None])


def init_params(key, dim, seq_len):
    """Deterministic init matching nn.LSTM / nn.LayerNorm default schemes."""
    D = seq_len
    k = 1.0 / math.sqrt(D)
    k0, k1, k2, k3 = jax.random.split(key, 4)
    return {
        "w_ih": jax.random.uniform(k0, (4 * D, D), jnp.float32, -k, k),
        "w_hh": jax.random.uniform(k1, (4 * D, D), jnp.float32, -k, k),
        "b_ih": jax.random.uniform(k2, (4 * D,), jnp.float32, -k, k),
        "b_hh": jax.random.uniform(k3, (4 * D,), jnp.float32, -k, k),
        "gnw": jnp.ones((dim, D), jnp.float32),   # LayerNorm([dim, seq_len]) weight
        "gnb": jnp.zeros((dim, D), jnp.float32),  # LayerNorm([dim, seq_len]) bias
        "hnw": jnp.ones((D,), jnp.float32),       # LayerNorm([seq_len]) weight
        "hnb": jnp.zeros((D,), jnp.float32),      # LayerNorm([seq_len]) bias
    }


if __name__ == "__main__":
    batch, dim, seq_len = 2, 8, 32          # x: (B, T=dim, D=seq_len)

    root = jax.random.PRNGKey(0)
    kp, kx = jax.random.split(root)
    params = init_params(kp, dim, seq_len)
    x = jax.random.normal(kx, (batch, dim, seq_len), jnp.float32)

    out, (h_n, c_n) = lstm_layer_forward(x, params)
    jax.block_until_ready((out, h_n, c_n))

    assert out.shape == (batch, dim, seq_len)
    assert h_n.shape == (1, batch, seq_len) and c_n.shape == (1, batch, seq_len)

    # Tight check vs a reference that truncates MXU operands to bf16 exactly as the kernel does.
    out_m, (h_m, c_m) = reference_forward(x, params, mxu_bf16=True)
    assert jnp.allclose(out, out_m, atol=2e-3, rtol=2e-3)
    assert jnp.allclose(h_n, h_m, atol=2e-3, rtol=2e-3)
    assert jnp.allclose(c_n, c_m, atol=2e-3, rtol=2e-3)

    # Looser sanity check vs the pure-f32 reference (bf16 MXU operands drift slightly after
    # the LayerNorm rescale).
    out_f, (h_f, c_f) = reference_forward(x, params, mxu_bf16=False)
    assert jnp.allclose(out, out_f, atol=2e-2, rtol=2e-2)
    assert jnp.allclose(h_n, h_f, atol=2e-2, rtol=2e-2)
    assert jnp.allclose(c_n, c_f, atol=2e-2, rtol=2e-2)

    print("KERNEL_OK")
</pallas_src>

<mosaic_0001>
module attributes {stable_mosaic.version = 11 : i64} {
  func.func @lstm_layer_kernel(%arg0: memref<16x32xbf16, #tpu.memory_space<vmem>>, %arg1: memref<32x128xbf16, #tpu.memory_space<vmem>>, %arg2: memref<32x128xbf16, #tpu.memory_space<vmem>>, %arg3: memref<1x128xf32, #tpu.memory_space<vmem>>, %arg4: memref<1x256xf32, #tpu.memory_space<vmem>>, %arg5: memref<1x256xf32, #tpu.memory_space<vmem>>, %arg6: memref<1x32xf32, #tpu.memory_space<vmem>>, %arg7: memref<1x32xf32, #tpu.memory_space<vmem>>, %arg8: memref<2x256xf32, #tpu.memory_space<vmem>>, %arg9: memref<2x64xf32, #tpu.memory_space<vmem>>) attributes {dimension_semantics = [], scalar_prefetch = 0 : i64, scratch_operands = 0 : i64, tpu.core_type = #tpu.core_type<tc>} {
    %c0 = arith.constant 0 : index
    %c0_0 = arith.constant 0 : index
    %0 = vector.load %arg1[%c0, %c0_0] : memref<32x128xbf16, #tpu.memory_space<vmem>>, vector<32x128xbf16>
    %c0_1 = arith.constant 0 : index
    %c0_2 = arith.constant 0 : index
    %1 = vector.load %arg2[%c0_1, %c0_2] : memref<32x128xbf16, #tpu.memory_space<vmem>>, vector<32x128xbf16>
    %c0_3 = arith.constant 0 : index
    %c0_4 = arith.constant 0 : index
    %2 = vector.load %arg3[%c0_3, %c0_4] : memref<1x128xf32, #tpu.memory_space<vmem>>, vector<1x128xf32>
    %c0_5 = arith.constant 0 : index
    %c0_6 = arith.constant 0 : index
    %3 = vector.load %arg0[%c0_5, %c0_6] : memref<16x32xbf16, #tpu.memory_space<vmem>>, vector<16x32xbf16>
    %cst = arith.constant dense<0.000000e+00> : vector<16x128xf32>
    %4 = tpu.matmul %3, %0, %cst {dimension_numbers = #tpu.dot_dimension_numbers<[1], [0], [0], [1], [0, 0, 1, 1], [], []>} : vector<16x32xbf16>, vector<32x128xbf16>, vector<16x128xf32> -> vector<16x128xf32>
    %5 = vector.broadcast %2 : vector<1x128xf32> to vector<16x128xf32>
    %6 = arith.addf %4, %5 : vector<16x128xf32>
    %7 = vector.shape_cast %6 : vector<16x128xf32> to vector<2x1024xf32>
    %cst_7 = arith.constant 0.000000e+00 : f32
    %8 = vector.broadcast %cst_7 : f32 to vector<2x32xf32>
    %cst_8 = arith.constant 0.000000e+00 : f32
    %9 = vector.broadcast %cst_8 : f32 to vector<2x32xf32>
    %10 = vector.extract_strided_slice %7 {offsets = [0, 0], sizes = [2, 128], strides = [1, 1]} : vector<2x1024xf32> to vector<2x128xf32>
    %11 = arith.truncf %8 : vector<2x32xf32> to vector<2x32xbf16>
    %cst_9 = arith.constant dense<0.000000e+00> : vector<2x128xf32>
    %12 = tpu.matmul %11, %1, %cst_9 {dimension_numbers = #tpu.dot_dimension_numbers<[1], [0], [0], [1], [0, 0, 1, 1], [], []>} : vector<2x32xbf16>, vector<32x128xbf16>, vector<2x128xf32> -> vector<2x128xf32>
    %13 = arith.addf %10, %12 : vector<2x128xf32>
    %14 = math.tanh %13 : vector<2x128xf32>
    %cst_10 = arith.constant 5.000000e-01 : f32
    %15 = vector.broadcast %cst_10 : f32 to vector<2x128xf32>
    %16 = arith.mulf %15, %14 : vector<2x128xf32>
    %cst_11 = arith.constant 5.000000e-01 : f32
    %17 = vector.broadcast %cst_11 : f32 to vector<2x128xf32>
    %18 = arith.addf %16, %17 : vector<2x128xf32>
    %19 = vector.extract_strided_slice %18 {offsets = [0, 0], sizes = [2, 32], strides = [1, 1]} : vector<2x128xf32> to vector<2x32xf32>
    %20 = vector.extract_strided_slice %18 {offsets = [0, 32], sizes = [2, 32], strides = [1, 1]} : vector<2x128xf32> to vector<2x32xf32>
    %21 = vector.extract_strided_slice %14 {offsets = [0, 64], sizes = [2, 32], strides = [1, 1]} : vector<2x128xf32> to vector<2x32xf32>
    %22 = vector.extract_strided_slice %18 {offsets = [0, 96], sizes = [2, 32], strides = [1, 1]} : vector<2x128xf32> to vector<2x32xf32>
    %23 = arith.mulf %20, %9 : vector<2x32xf32>
    %24 = arith.mulf %19, %21 : vector<2x32xf32>
    %25 = arith.addf %23, %24 : vector<2x32xf32>
    %26 = math.tanh %25 : vector<2x32xf32>
    %27 = arith.mulf %22, %26 : vector<2x32xf32>
    %c0_12 = arith.constant 0 : index
    %c0_13 = arith.constant 0 : index
    %28 = vector.load %arg8[%c0_12, %c0_13] : memref<2x256xf32, #tpu.memory_space<vmem>>, vector<2x32xf32>
    tpu.vector_store %arg8[%c0_12, %c0_13], %27 {strides = array<i32>} : memref<2x256xf32, #tpu.memory_space<vmem>>, vector<2x32xf32>,
    %29 = vector.extract_strided_slice %7 {offsets = [0, 128], sizes = [2, 128], strides = [1, 1]} : vector<2x1024xf32> to vector<2x128xf32>
    %30 = arith.truncf %27 : vector<2x32xf32> to vector<2x32xbf16>
    %cst_14 = arith.constant dense<0.000000e+00> : vector<2x128xf32>
    %31 = tpu.matmul %30, %1, %cst_14 {dimension_numbers = #tpu.dot_dimension_numbers<[1], [0], [0], [1], [0, 0, 1, 1], [], []>} : vector<2x32xbf16>, vector<32x128xbf16>, vector<2x128xf32> -> vector<2x128xf32>
    %32 = arith.addf %29, %31 : vector<2x128xf32>
    %33 = math.tanh %32 : vector<2x128xf32>
    %cst_15 = arith.constant 5.000000e-01 : f32
    %34 = vector.broadcast %cst_15 : f32 to vector<2x128xf32>
    %35 = arith.mulf %34, %33 : vector<2x128xf32>
    %cst_16 = arith.constant 5.000000e-01 : f32
    %36 = vector.broadcast %cst_16 : f32 to vector<2x128xf32>
    %37 = arith.addf %35, %36 : vector<2x128xf32>
    %38 = vector.extract_strided_slice %37 {offsets = [0, 0], sizes = [2, 32], strides = [1, 1]} : vector<2x128xf32> to vector<2x32xf32>
    %39 = vector.extract_strided_slice %37 {offsets = [0, 32], sizes = [2, 32], strides = [1, 1]} : vector<2x128xf32> to vector<2x32xf32>
    %40 = vector.extract_strided_slice %33 {offsets = [0, 64], sizes = [2, 32], strides = [1, 1]} : vector<2x128xf32> to vector<2x32xf32>
    %41 = vector.extract_strided_slice %37 {offsets = [0, 96], sizes = [2, 32], strides = [1, 1]} : vector<2x128xf32> to vector<2x32xf32>
    %42 = arith.mulf %39, %25 : vector<2x32xf32>
    %43 = arith.mulf %38, %40 : vector<2x32xf32>
    %44 = arith.addf %42, %43 : vector<2x32xf32>
    %45 = math.tanh %44 : vector<2x32xf32>
    %46 = arith.mulf %41, %45 : vector<2x32xf32>
    %c0_17 = arith.constant 0 : index
    %c32 = arith.constant 32 : index
    %47 = vector.load %arg8[%c0_17, %c32] : memref<2x256xf32, #tpu.memory_space<vmem>>, vector<2x32xf32>
    tpu.vector_store %arg8[%c0_17, %c32], %46 {strides = array<i32>} : memref<2x256xf32, #tpu.memory_space<vmem>>, vector<2x32xf32>,
    %48 = vector.extract_strided_slice %7 {offsets = [0, 256], sizes = [2, 128], strides = [1, 1]} : vector<2x1024xf32> to vector<2x128xf32>
    %49 = arith.truncf %46 : vector<2x32xf32> to vector<2x32xbf16>
    %cst_18 = arith.constant dense<0.000000e+00> : vector<2x128xf32>
    %50 = tpu.matmul %49, %1, %cst_18 {dimension_numbers = #tpu.dot_dimension_numbers<[1], [0], [0], [1], [0, 0, 1, 1], [], []>} : vector<2x32xbf16>, vector<32x128xbf16>, vector<2x128xf32> -> vector<2x128xf32>
    %51 = arith.addf %48, %50 : vector<2x128xf32>
    %52 = math.tanh %51 : vector<2x128xf32>
    %cst_19 = arith.constant 5.000000e-01 : f32
    %53 = vector.broadcast %cst_19 : f32 to vector<2x128xf32>
    %54 = arith.mulf %53, %52 : vector<2x128xf32>
    %cst_20 = arith.constant 5.000000e-01 : f32
    %55 = vector.broadcast %cst_20 : f32 to vector<2x128xf32>
    %56 = arith.addf %54, %55 : vector<2x128xf32>
    %57 = vector.extract_strided_slice %56 {offsets = [0, 0], sizes = [2, 32], strides = [1, 1]} : vector<2x128xf32> to vector<2x32xf32>
    %58 = vector.extract_strided_slice %56 {offsets = [0, 32], sizes = [2, 32], strides = [1, 1]} : vector<2x128xf32> to vector<2x32xf32>
    %59 = vector.extract_strided_slice %52 {offsets = [0, 64], sizes = [2, 32], strides = [1, 1]} : vector<2x128xf32> to vector<2x32xf32>
    %60 = vector.extract_strided_slice %56 {offsets = [0, 96], sizes = [2, 32], strides = [1, 1]} : vector<2x128xf32> to vector<2x32xf32>
    %61 = arith.mulf %58, %44 : vector<2x32xf32>
    %62 = arith.mulf %57, %59 : vector<2x32xf32>
    %63 = arith.addf %61, %62 : vector<2x32xf32>
    %64 = math.tanh %63 : vector<2x32xf32>
    %65 = arith.mulf %60, %64 : vector<2x32xf32>
    %c0_21 = arith.constant 0 : index
    %c64 = arith.constant 64 : index
    %66 = vector.load %arg8[%c0_21, %c64] : memref<2x256xf32, #tpu.memory_space<vmem>>, vector<2x32xf32>
    tpu.vector_store %arg8[%c0_21, %c64], %65 {strides = array<i32>} : memref<2x256xf32, #tpu.memory_space<vmem>>, vector<2x32xf32>,
    %67 = vector.extract_strided_slice %7 {offsets = [0, 384], sizes = [2, 128], strides = [1, 1]} : vector<2x1024xf32> to vector<2x128xf32>
    %68 = arith.truncf %65 : vector<2x32xf32> to vector<2x32xbf16>
    %cst_22 = arith.constant dense<0.000000e+00> : vector<2x128xf32>
    %69 = tpu.matmul %68, %1, %cst_22 {dimension_numbers = #tpu.dot_dimension_numbers<[1], [0], [0], [1], [0, 0, 1, 1], [], []>} : vector<2x32xbf16>, vector<32x128xbf16>, vector<2x128xf32> -> vector<2x128xf32>
    %70 = arith.addf %67, %69 : vector<2x128xf32>
    %71 = math.tanh %70 : vector<2x128xf32>
    %cst_23 = arith.constant 5.000000e-01 : f32
    %72 = vector.broadcast %cst_23 : f32 to vector<2x128xf32>
    %73 = arith.mulf %72, %71 : vector<2x128xf32>
    %cst_24 = arith.constant 5.000000e-01 : f32
    %74 = vector.broadcast %cst_24 : f32 to vector<2x128xf32>
    %75 = arith.addf %73, %74 : vector<2x128xf32>
    %76 = vector.extract_strided_slice %75 {offsets = [0, 0], sizes = [2, 32], strides = [1, 1]} : vector<2x128xf32> to vector<2x32xf32>
    %77 = vector.extract_strided_slice %75 {offsets = [0, 32], sizes = [2, 32], strides = [1, 1]} : vector<2x128xf32> to vector<2x32xf32>
    %78 = vector.extract_strided_slice %71 {offsets = [0, 64], sizes = [2, 32], strides = [1, 1]} : vector<2x128xf32> to vector<2x32xf32>
    %79 = vector.extract_strided_slice %75 {offsets = [0, 96], sizes = [2, 32], strides = [1, 1]} : vector<2x128xf32> to vector<2x32xf32>
    %80 = arith.mulf %77, %63 : vector<2x32xf32>
    %81 = arith.mulf %76, %78 : vector<2x32xf32>
    %82 = arith.addf %80, %81 : vector<2x32xf32>
    %83 = math.tanh %82 : vector<2x32xf32>
    %84 = arith.mulf %79, %83 : vector<2x32xf32>
    %c0_25 = arith.constant 0 : index
    %c96 = arith.constant 96 : index
    %85 = vector.load %arg8[%c0_25, %c96] : memref<2x256xf32, #tpu.memory_space<vmem>>, vector<2x32xf32>
    tpu.vector_store %arg8[%c0_25, %c96], %84 {strides = array<i32>} : memref<2x256xf32, #tpu.memory_space<vmem>>, vector<2x32xf32>,
    %86 = vector.extract_strided_slice %7 {offsets = [0, 512], sizes = [2, 128], strides = [1, 1]} : vector<2x1024xf32> to vector<2x128xf32>
    %87 = arith.truncf %84 : vector<2x32xf32> to vector<2x32xbf16>
    %cst_26 = arith.constant dense<0.000000e+00> : vector<2x128xf32>
    %88 = tpu.matmul %87, %1, %cst_26 {dimension_numbers = #tpu.dot_dimension_numbers<[1], [0], [0], [1], [0, 0, 1, 1], [], []>} : vector<2x32xbf16>, vector<32x128xbf16>, vector<2x128xf32> -> vector<2x128xf32>
    %89 = arith.addf %86, %88 : vector<2x128xf32>
    %90 = math.tanh %89 : vector<2x128xf32>
    %cst_27 = arith.constant 5.000000e-01 : f32
    %91 = vector.broadcast %cst_27 : f32 to vector<2x128xf32>
    %92 = arith.mulf %91, %90 : vector<2x128xf32>
    %cst_28 = arith.constant 5.000000e-01 : f32
    %93 = vector.broadcast %cst_28 : f32 to vector<2x128xf32>
    %94 = arith.addf %92, %93 : vector<2x128xf32>
    %95 = vector.extract_strided_slice %94 {offsets = [0, 0], sizes = [2, 32], strides = [1, 1]} : vector<2x128xf32> to vector<2x32xf32>
    %96 = vector.extract_strided_slice %94 {offsets = [0, 32], sizes = [2, 32], strides = [1, 1]} : vector<2x128xf32> to vector<2x32xf32>
    %97 = vector.extract_strided_slice %90 {offsets = [0, 64], sizes = [2, 32], strides = [1, 1]} : vector<2x128xf32> to vector<2x32xf32>
    %98 = vector.extract_strided_slice %94 {offsets = [0, 96], sizes = [2, 32], strides = [1, 1]} : vector<2x128xf32> to vector<2x32xf32>
    %99 = arith.mulf %96, %82 : vector<2x32xf32>
    %100 = arith.mulf %95, %97 : vector<2x32xf32>
    %101 = arith.addf %99, %100 : vector<2x32xf32>
    %102 = math.tanh %101 : vector<2x32xf32>
    %103 = arith.mulf %98, %102 : vector<2x32xf32>
    %c0_29 = arith.constant 0 : index
    %c128 = arith.constant 128 : index
    %104 = vector.load %arg8[%c0_29, %c128] : memref<2x256xf32, #tpu.memory_space<vmem>>, vector<2x32xf32>
    tpu.vector_store %arg8[%c0_29, %c128], %103 {strides = array<i32>} : memref<2x256xf32, #tpu.memory_space<vmem>>, vector<2x32xf32>,
    %105 = vector.extract_strided_slice %7 {offsets = [0, 640], sizes = [2, 128], strides = [1, 1]} : vector<2x1024xf32> to vector<2x128xf32>
    %106 = arith.truncf %103 : vector<2x32xf32> to vector<2x32xbf16>
    %cst_30 = arith.constant dense<0.000000e+00> : vector<2x128xf32>
    %107 = tpu.matmul %106, %1, %cst_30 {dimension_numbers = #tpu.dot_dimension_numbers<[1], [0], [0], [1], [0, 0, 1, 1], [], []>} : vector<2x32xbf16>, vector<32x128xbf16>, vector<2x128xf32> -> vector<2x128xf32>
    %108 = arith.addf %105, %107 : vector<2x128xf32>
    %109 = math.tanh %108 : vector<2x128xf32>
    %cst_31 = arith.constant 5.000000e-01 : f32
    %110 = vector.broadcast %cst_31 : f32 to vector<2x128xf32>
    %111 = arith.mulf %110, %109 : vector<2x128xf32>
    %cst_32 = arith.constant 5.000000e-01 : f32
    %112 = vector.broadcast %cst_32 : f32 to vector<2x128xf32>
    %113 = arith.addf %111, %112 : vector<2x128xf32>
    %114 = vector.extract_strided_slice %113 {offsets = [0, 0], sizes = [2, 32], strides = [1, 1]} : vector<2x128xf32> to vector<2x32xf32>
    %115 = vector.extract_strided_slice %113 {offsets = [0, 32], sizes = [2, 32], strides = [1, 1]} : vector<2x128xf32> to vector<2x32xf32>
    %116 = vector.extract_strided_slice %109 {offsets = [0, 64], sizes = [2, 32], strides = [1, 1]} : vector<2x128xf32> to vector<2x32xf32>
    %117 = vector.extract_strided_slice %113 {offsets = [0, 96], sizes = [2, 32], strides = [1, 1]} : vector<2x128xf32> to vector<2x32xf32>
    %118 = arith.mulf %115, %101 : vector<2x32xf32>
    %119 = arith.mulf %114, %116 : vector<2x32xf32>
    %120 = arith.addf %118, %119 : vector<2x32xf32>
    %121 = math.tanh %120 : vector<2x32xf32>
    %122 = arith.mulf %117, %121 : vector<2x32xf32>
    %c0_33 = arith.constant 0 : index
    %c160 = arith.constant 160 : index
    %123 = vector.load %arg8[%c0_33, %c160] : memref<2x256xf32, #tpu.memory_space<vmem>>, vector<2x32xf32>
    tpu.vector_store %arg8[%c0_33, %c160], %122 {strides = array<i32>} : memref<2x256xf32, #tpu.memory_space<vmem>>, vector<2x32xf32>,
    %124 = vector.extract_strided_slice %7 {offsets = [0, 768], sizes = [2, 128], strides = [1, 1]} : vector<2x1024xf32> to vector<2x128xf32>
    %125 = arith.truncf %122 : vector<2x32xf32> to vector<2x32xbf16>
    %cst_34 = arith.constant dense<0.000000e+00> : vector<2x128xf32>
    %126 = tpu.matmul %125, %1, %cst_34 {dimension_numbers = #tpu.dot_dimension_numbers<[1], [0], [0], [1], [0, 0, 1, 1], [], []>} : vector<2x32xbf16>, vector<32x128xbf16>, vector<2x128xf32> -> vector<2x128xf32>
    %127 = arith.addf %124, %126 : vector<2x128xf32>
    %128 = math.tanh %127 : vector<2x128xf32>
    %cst_35 = arith.constant 5.000000e-01 : f32
    %129 = vector.broadcast %cst_35 : f32 to vector<2x128xf32>
    %130 = arith.mulf %129, %128 : vector<2x128xf32>
    %cst_36 = arith.constant 5.000000e-01 : f32
    %131 = vector.broadcast %cst_36 : f32 to vector<2x128xf32>
    %132 = arith.addf %130, %131 : vector<2x128xf32>
    %133 = vector.extract_strided_slice %132 {offsets = [0, 0], sizes = [2, 32], strides = [1, 1]} : vector<2x128xf32> to vector<2x32xf32>
    %134 = vector.extract_strided_slice %132 {offsets = [0, 32], sizes = [2, 32], strides = [1, 1]} : vector<2x128xf32> to vector<2x32xf32>
    %135 = vector.extract_strided_slice %128 {offsets = [0, 64], sizes = [2, 32], strides = [1, 1]} : vector<2x128xf32> to vector<2x32xf32>
    %136 = vector.extract_strided_slice %132 {offsets = [0, 96], sizes = [2, 32], strides = [1, 1]} : vector<2x128xf32> to vector<2x32xf32>
    %137 = arith.mulf %134, %120 : vector<2x32xf32>
    %138 = arith.mulf %133, %135 : vector<2x32xf32>
    %139 = arith.addf %137, %138 : vector<2x32xf32>
    %140 = math.tanh %139 : vector<2x32xf32>
    %141 = arith.mulf %136, %140 : vector<2x32xf32>
    %c0_37 = arith.constant 0 : index
    %c192 = arith.constant 192 : index
    %142 = vector.load %arg8[%c0_37, %c192] : memref<2x256xf32, #tpu.memory_space<vmem>>, vector<2x32xf32>
    tpu.vector_store %arg8[%c0_37, %c192], %141 {strides = array<i32>} : memref<2x256xf32, #tpu.memory_space<vmem>>, vector<2x32xf32>,
    %143 = vector.extract_strided_slice %7 {offsets = [0, 896], sizes = [2, 128], strides = [1, 1]} : vector<2x1024xf32> to vector<2x128xf32>
    %144 = arith.truncf %141 : vector<2x32xf32> to vector<2x32xbf16>
    %cst_38 = arith.constant dense<0.000000e+00> : vector<2x128xf32>
    %145 = tpu.matmul %144, %1, %cst_38 {dimension_numbers = #tpu.dot_dimension_numbers<[1], [0], [0], [1], [0, 0, 1, 1], [], []>} : vector<2x32xbf16>, vector<32x128xbf16>, vector<2x128xf32> -> vector<2x128xf32>
    %146 = arith.addf %143, %145 : vector<2x128xf32>
    %147 = math.tanh %146 : vector<2x128xf32>
    %cst_39 = arith.constant 5.000000e-01 : f32
    %148 = vector.broadcast %cst_39 : f32 to vector<2x128xf32>
    %149 = arith.mulf %148, %147 : vector<2x128xf32>
    %cst_40 = arith.constant 5.000000e-01 : f32
    %150 = vector.broadcast %cst_40 : f32 to vector<2x128xf32>
    %151 = arith.addf %149, %150 : vector<2x128xf32>
    %152 = vector.extract_strided_slice %151 {offsets = [0, 0], sizes = [2, 32], strides = [1, 1]} : vector<2x128xf32> to vector<2x32xf32>
    %153 = vector.extract_strided_slice %151 {offsets = [0, 32], sizes = [2, 32], strides = [1, 1]} : vector<2x128xf32> to vector<2x32xf32>
    %154 = vector.extract_strided_slice %147 {offsets = [0, 64], sizes = [2, 32], strides = [1, 1]} : vector<2x128xf32> to vector<2x32xf32>
    %155 = vector.extract_strided_slice %151 {offsets = [0, 96], sizes = [2, 32], strides = [1, 1]} : vector<2x128xf32> to vector<2x32xf32>
    %156 = arith.mulf %153, %139 : vector<2x32xf32>
    %157 = arith.mulf %152, %154 : vector<2x32xf32>
    %158 = arith.addf %156, %157 : vector<2x32xf32>
    %159 = math.tanh %158 : vector<2x32xf32>
    %160 = arith.mulf %155, %159 : vector<2x32xf32>
    %c0_41 = arith.constant 0 : index
    %c224 = arith.constant 224 : index
    %161 = vector.load %arg8[%c0_41, %c224] : memref<2x256xf32, #tpu.memory_space<vmem>>, vector<2x32xf32>
    tpu.vector_store %arg8[%c0_41, %c224], %160 {strides = array<i32>} : memref<2x256xf32, #tpu.memory_space<vmem>>, vector<2x32xf32>,
    %c0_42 = arith.constant 0 : index
    %c0_43 = arith.constant 0 : index
    %162 = vector.load %arg8[%c0_42, %c0_43] : memref<2x256xf32, #tpu.memory_space<vmem>>, vector<2x256xf32>
    %cst_44 = arith.constant dense<0.000000e+00> : vector<2xf32>
    %163 = vector.multi_reduction <add>, %162, %cst_44 [1] : vector<2x256xf32> to vector<2xf32>
    %164 = vector.shape_cast %163 : vector<2xf32> to vector<2x1xf32>
    %cst_45 = arith.constant 2.560000e+02 : f32
    %165 = vector.broadcast %cst_45 : f32 to vector<2x1xf32>
    %166 = arith.divf %164, %165 : vector<2x1xf32>
    %167 = vector.broadcast %166 : vector<2x1xf32> to vector<2x256xf32>
    %168 = arith.subf %162, %167 : vector<2x256xf32>
    %169 = arith.mulf %168, %168 : vector<2x256xf32>
    %cst_46 = arith.constant dense<0.000000e+00> : vector<2xf32>
    %170 = vector.multi_reduction <add>, %169, %cst_46 [1] : vector<2x256xf32> to vector<2xf32>
    %171 = vector.shape_cast %170 : vector<2xf32> to vector<2x1xf32>
    %cst_47 = arith.constant 2.560000e+02 : f32
    %172 = vector.broadcast %cst_47 : f32 to vector<2x1xf32>
    %173 = arith.divf %171, %172 : vector<2x1xf32>
    %cst_48 = arith.constant 9.99999974E-6 : f32
    %174 = vector.broadcast %cst_48 : f32 to vector<2x1xf32>
    %175 = arith.addf %173, %174 : vector<2x1xf32>
    %176 = math.rsqrt %175 : vector<2x1xf32>
    %177 = vector.broadcast %176 : vector<2x1xf32> to vector<2x256xf32>
    %178 = arith.mulf %168, %177 : vector<2x256xf32>
    %c0_49 = arith.constant 0 : index
    %c0_50 = arith.constant 0 : index
    %179 = vector.load %arg4[%c0_49, %c0_50] : memref<1x256xf32, #tpu.memory_space<vmem>>, vector<1x256xf32>
    %180 = vector.broadcast %179 : vector<1x256xf32> to vector<2x256xf32>
    %181 = arith.mulf %178, %180 : vector<2x256xf32>
    %c0_51 = arith.constant 0 : index
    %c0_52 = arith.constant 0 : index
    %182 = vector.load %arg5[%c0_51, %c0_52] : memref<1x256xf32, #tpu.memory_space<vmem>>, vector<1x256xf32>
    %183 = vector.broadcast %182 : vector<1x256xf32> to vector<2x256xf32>
    %184 = arith.addf %181, %183 : vector<2x256xf32>
    %c0_53 = arith.constant 0 : index
    %c0_54 = arith.constant 0 : index
    %185 = vector.load %arg8[%c0_53, %c0_54] : memref<2x256xf32, #tpu.memory_space<vmem>>, vector<2x256xf32>
    tpu.vector_store %arg8[%c0_53, %c0_54], %184 {strides = array<i32>} : memref<2x256xf32, #tpu.memory_space<vmem>>, vector<2x256xf32>,
    %c0_55 = arith.constant 0 : index
    %c0_56 = arith.constant 0 : index
    %186 = vector.load %arg6[%c0_55, %c0_56] : memref<1x32xf32, #tpu.memory_space<vmem>>, vector<1x32xf32>
    %c0_57 = arith.constant 0 : index
    %c0_58 = arith.constant 0 : index
    %187 = vector.load %arg7[%c0_57, %c0_58] : memref<1x32xf32, #tpu.memory_space<vmem>>, vector<1x32xf32>
    %cst_59 = arith.constant dense<0.000000e+00> : vector<2xf32>
    %188 = vector.multi_reduction <add>, %160, %cst_59 [1] : vector<2x32xf32> to vector<2xf32>
    %189 = vector.shape_cast %188 : vector<2xf32> to vector<2x1xf32>
    %cst_60 = arith.constant 3.200000e+01 : f32
    %190 = vector.broadcast %cst_60 : f32 to vector<2x1xf32>
    %191 = arith.divf %189, %190 : vector<2x1xf32>
    %192 = vector.broadcast %191 : vector<2x1xf32> to vector<2x32xf32>
    %193 = arith.subf %160, %192 : vector<2x32xf32>
    %194 = arith.mulf %193, %193 : vector<2x32xf32>
    %cst_61 = arith.constant dense<0.000000e+00> : vector<2xf32>
    %195 = vector.multi_reduction <add>, %194, %cst_61 [1] : vector<2x32xf32> to vector<2xf32>
    %196 = vector.shape_cast %195 : vector<2xf32> to vector<2x1xf32>
    %cst_62 = arith.constant 3.200000e+01 : f32
    %197 = vector.broadcast %cst_62 : f32 to vector<2x1xf32>
    %198 = arith.divf %196, %197 : vector<2x1xf32>
    %cst_63 = arith.constant 9.99999974E-6 : f32
    %199 = vector.broadcast %cst_63 : f32 to vector<2x1xf32>
    %200 = arith.addf %198, %199 : vector<2x1xf32>
    %201 = math.rsqrt %200 : vector<2x1xf32>
    %202 = vector.broadcast %201 : vector<2x1xf32> to vector<2x32xf32>
    %203 = arith.mulf %193, %202 : vector<2x32xf32>
    %204 = vector.broadcast %186 : vector<1x32xf32> to vector<2x32xf32>
    %205 = arith.mulf %203, %204 : vector<2x32xf32>
    %206 = vector.broadcast %187 : vector<1x32xf32> to vector<2x32xf32>
    %207 = arith.addf %205, %206 : vector<2x32xf32>
    %c0_64 = arith.constant 0 : index
    %c0_65 = arith.constant 0 : index
    %208 = vector.load %arg9[%c0_64, %c0_65] : memref<2x64xf32, #tpu.memory_space<vmem>>, vector<2x32xf32>
    tpu.vector_store %arg9[%c0_64, %c0_65], %207 {strides = array<i32>} : memref<2x64xf32, #tpu.memory_space<vmem>>, vector<2x32xf32>,
    %cst_66 = arith.constant dense<0.000000e+00> : vector<2xf32>
    %209 = vector.multi_reduction <add>, %158, %cst_66 [1] : vector<2x32xf32> to vector<2xf32>
    %210 = vector.shape_cast %209 : vector<2xf32> to vector<2x1xf32>
    %cst_67 = arith.constant 3.200000e+01 : f32
    %211 = vector.broadcast %cst_67 : f32 to vector<2x1xf32>
    %212 = arith.divf %210, %211 : vector<2x1xf32>
    %213 = vector.broadcast %212 : vector<2x1xf32> to vector<2x32xf32>
    %214 = arith.subf %158, %213 : vector<2x32xf32>
    %215 = arith.mulf %214, %214 : vector<2x32xf32>
    %cst_68 = arith.constant dense<0.000000e+00> : vector<2xf32>
    %216 = vector.multi_reduction <add>, %215, %cst_68 [1] : vector<2x32xf32> to vector<2xf32>
    %217 = vector.shape_cast %216 : vector<2xf32> to vector<2x1xf32>
    %cst_69 = arith.constant 3.200000e+01 : f32
    %218 = vector.broadcast %cst_69 : f32 to vector<2x1xf32>
    %219 = arith.divf %217, %218 : vector<2x1xf32>
    %cst_70 = arith.constant 9.99999974E-6 : f32
    %220 = vector.broadcast %cst_70 : f32 to vector<2x1xf32>
    %221 = arith.addf %219, %220 : vector<2x1xf32>
    %222 = math.rsqrt %221 : vector<2x1xf32>
    %223 = vector.broadcast %222 : vector<2x1xf32> to vector<2x32xf32>
    %224 = arith.mulf %214, %223 : vector<2x32xf32>
    %225 = vector.broadcast %186 : vector<1x32xf32> to vector<2x32xf32>
    %226 = arith.mulf %224, %225 : vector<2x32xf32>
    %227 = vector.broadcast %187 : vector<1x32xf32> to vector<2x32xf32>
    %228 = arith.addf %226, %227 : vector<2x32xf32>
    %c0_71 = arith.constant 0 : index
    %c32_72 = arith.constant 32 : index
    %229 = vector.load %arg9[%c0_71, %c32_72] : memref<2x64xf32, #tpu.memory_space<vmem>>, vector<2x32xf32>
    tpu.vector_store %arg9[%c0_71, %c32_72], %228 {strides = array<i32>} : memref<2x64xf32, #tpu.memory_space<vmem>>, vector<2x32xf32>,
    return
  }
}

</mosaic_0001>

<bundles_post_ra>
// kernel: lstm_layer_forward.1
= control target key start
LH: loop header
LB: loop body
LE: loop exit
PB: predicated region body
PF: predicated region fallthrough
CT: control target
= control target key end

     0   :  { %v1869_v0 = vmov 0.0   ;;  %vm1870_vm0 = vmmov 0   ;;  %vm66_vm1 = vcmask 261120   ;;  %v1871_v6 = vmov 0   ;;  %s1876_s19 = smov 96   ;;  %s2313_s1 = inlined_call_operand.vmem [shape: bf16[32,128], index: 1, kind: input, shape index: {}]   ;;  %s2314_s2 = inlined_call_operand.vmem [shape: bf16[32,128], index: 2, kind: input, shape index: {}]   ;;  %s2315_s0 = inlined_call_operand.vmem [shape: bf16[16,32], index: 0, kind: input, shape index: {}]   ;;  %s2316_s3 = inlined_call_operand.vmem [shape: f32[1,128], index: 3, kind: input, shape index: {}]   ;;  %s2317_s8 = inlined_call_operand.vmem [shape: f32[2,256], index: 8, kind: output, shape index: {0}]   ;;  %s2318_s6 = inlined_call_operand.vmem [shape: f32[1,32], index: 6, kind: input, shape index: {}]   ;;  %s2319_s7 = inlined_call_operand.vmem [shape: f32[1,32], index: 7, kind: input, shape index: {}]   ;;  %s2320_s4 = inlined_call_operand.vmem [shape: f32[1,256], index: 4, kind: input, shape index: {}]   ;;  %s2321_s5 = inlined_call_operand.vmem [shape: f32[1,256], index: 5, kind: input, shape index: {}]   ;;  %s2322_s9 = inlined_call_operand.vmem [shape: f32[2,64], index: 9, kind: output, shape index: {1}]  }
   0x1   :  { %1712 = vmatprep.subr.bf16.mxu0 %v1869_v0  ;;  %1720 = vmatprep.subr.bf16.mxu1 %v1869_v0  ;;  %v1794_v1 = vld [vmem:[%s2313_s1] sm:$0xff]   ;;  %v1796_v3 = vld [vmem:[%s2313_s1 + $0x8] sm:$0xff]   ;;  %v1872_v7 = vmov 1966171168   ;;  %v170_v9 = vlaneseq  ;;  %vm246_vm2 = vcmask 254976   ;;  %vm396_vm3 = vcmask 517376  }
   0x2   :  { %v1937_v2 = vld [vmem:[%s2314_s2] sm:$0xff]   ;;  %1716 = vmatprep.mubr.msk.bf16.mxu0 %vm1870_vm0, %v1869_v0  ;;  %1724 = vmatprep.mubr.msk.bf16.mxu1 %vm1870_vm0, %v1869_v0  ;;  %v1951_v4 = vld [vmem:[%s2314_s2 + $0x8] sm:$0xff]   ;;  %v168_v8 = vunpack.c.l.s4 %v1872_v7  ;;  %s1873_s2 = smov 64   ;;  %vm544_vm4 = vcmask 779776   ;;  %vm690_vm5 = vcmask 1042176   ;;  %vm1290_vm6 = vcmask 1041408  }
   0x3   :  { %1713 = vmatpush3.bf16.msra.mxu0 %v1794_v1  ;;  %1721 = vmatpush3.bf16.msra.mxu1 %v1937_v2  ;;  %v1798_v5 = vld [vmem:[%s2315_s0] sm:$0xff]   ;;  %v1973_v11 = vshrl.u32 %v170_v9, 7 }
   0x4   :  { %1714 = vmatprep.subr.bf16.mxu0 %v1869_v0  ;;  %1722 = vmatprep.subr.bf16.mxu1 %v1869_v0  ;;  %v169_v10 = vunpack.c.0.s8 %v168_v8  ;;  %v1669_v13 = vld [vmem:[%s2316_s3] ss:$0 sm:$0xff]  ;;  %s1874_s3 = smov 32  }
   0x6   :  { %v1976_v12 = vsub.s32 %v169_v10, %v1973_v11 }
   0x7   :  { %1715 = vmatpush3.bf16.msra.mxu0 %v1796_v3  ;;  %1723 = vmatpush3.bf16.msra.mxu1 %v1951_v4 }
   0x8   :  { %1728 = vmatprep.subr.bf16.mxu0 %v1869_v0  ;;  %1736 = vmatprep.subr.bf16.mxu1 %v1869_v0 }
   0xa   :  { %1717 = vmatmul.mubr.msk.bf16.vlgmr.msra.gmra.mrb[0].mxu0 %vm66_vm1, %v1798_v5  ;;  %1725 = vmatmul.mubr.bf16.vlgmr.msra.gmra.mrb[0].mxu1 %v1871_v6 }
   0xb   :  { %1729 = vmatpush3.bf16.msra.mxu0 %v1937_v2  ;;  %1732 = vmatprep.mubr.msk.bf16.mxu0 %vm1870_vm0, %v1869_v0 }
   0xc   :  { %1730 = vmatprep.subr.bf16.mxu0 %v1869_v0  ;;  %1737 = vmatpush3.bf16.msra.mxu1 %v1937_v2 }
   0xd   :  { %1740 = vmatprep.mubr.msk.bf16.mxu1 %vm1870_vm0, %v1869_v0  ;;  %1738 = vmatprep.subr.bf16.mxu1 %v1869_v0 }
   0xf   :  { %1731 = vmatpush3.bf16.msra.mxu0 %v1951_v4 }
  0x10   :  { %1744 = vmatprep.subr.bf16.mxu0 %v1869_v0  ;;  %1739 = vmatpush3.bf16.msra.mxu1 %v1951_v4 }
  0x11   :  { %1752 = vmatprep.subr.bf16.mxu1 %v1869_v0 }
  0xdd   :  { %v104_v14 = vpop.f32.mrb[0].mxu0  ;;  %v160_v15 = vpop.f32.mrb[0].mxu1 }
  0xde   :  { %v1718_v16 = vpop.f32.mrb[1].mxu0  ;;  %v1981_v17 = vadd.f32 %v1669_v13, %v104_v14  ;;  %v173_v18 = vrot.slane %v160_v15, %v1976_v12  ;;  %v1726_v19 = vpop.f32.mrb[1].mxu1 }
  0xdf   :  { %v107_v20 = vpop.f32.mrb[2].mxu0  ;;  %v163_v21 = vpop.f32.mrb[2].mxu1 }
  0xe0   :  { %v1719_v22 = vpop.f32.mrb[3].mxu0  ;;  %v174_v23 = vcombine.high %v173_v18, %v173_v18  ;;  %v181_v24 = vrot.slane %v173_v18, %v1976_v12  ;;  %v1727_v25 = vpop.f32.mrb[3].mxu1  ;;  %v1987_v28 = vadd.f32 %v1669_v13, %v107_v20  ;;  %v312_v61 = vrot.slane %v1981_v17, 1 }
  0xe2   :  { %v188_v26 = vrot.slane %v174_v23, %v1976_v12  ;;  %v191_v27 = vadd.f32 %v181_v24, %v1981_v17  ;;  %v313_v3 = vrot.slane %v1987_v28, 1 }
  0xe4   :  { %1799 = vtanh.f32 %v191_v27  ;;  %v192_v29 = vadd.f32 %v188_v26, %v1987_v28 }
  0xe6   :  { %1801 = vtanh.f32 %v192_v29 }
  0xee   :  { %v1800_v30 = vpop.eup %1799 }
  0xef   :  { %203 = vrot.lane.b32.xlu0 %v1800_v30, %s1873_s2  ;;  %v195_v32 = vmul.f32 0.5, %v1800_v30 }
  0xf0   :  { %v1802_v31 = vpop.eup %1801 }
  0xf1   :  { %v197_v33 = vadd.f32 0.5, %v195_v32  ;;  %v196_v34 = vmul.f32 0.5, %v1802_v31 }
  0xf3   :  { %205 = vrot.lane.b32.xlu0 %v1802_v31, %s1873_s2  ;;  %v198_v37 = vadd.f32 0.5, %v196_v34  ;;  %v199_v40 = vmul.f32 0.0, %v197_v33 }
  0xf5   :  { %v200_v43 = vmul.f32 0.0, %v198_v37 }
 0x161   :  { %v204_v35 = vpop.permute.xlu0 %203 }
 0x162   :  { %v209_v36 = vmul.f32 %v204_v35, %v197_v33 }
 0x164   :  { %213 = vrot.lane.b32.xlu1 %v209_v36, %s1874_s3 }
 0x165   :  { %v206_v38 = vpop.permute.xlu0 %205 }
 0x166   :  { %v210_v39 = vmul.f32 %v206_v38, %v198_v37 }
 0x168   :  { %215 = vrot.lane.b32.xlu1 %v210_v39, %s1874_s3 }
 0x1d6   :  { %v214_v41 = vpop.permute.xlu1 %213 }
 0x1d7   :  { %v219_v42 = vadd.f32 %v214_v41, %v199_v40 }
 0x1d9   :  { %1803 = vtanh.f32 %v219_v42 }
 0x1da   :  { %v216_v44 = vpop.permute.xlu1 %215 }
 0x1db   :  { %v220_v45 = vadd.f32 %v216_v44, %v200_v43  ;;  %v460_v43 = vrot.slane %v1981_v17, 2 }
 0x1dd   :  { %1805 = vtanh.f32 %v220_v45 }
 0x1e3   :  { %v1804_v46 = vpop.eup %1803 }
 0x1e4   :  { %225 = vrot.lane.b32.xlu0 %v1804_v46, %s1873_s2 }
 0x1e7   :  { %v1806_v47 = vpop.eup %1805 }
 0x1e8   :  { %227 = vrot.lane.b32.xlu1 %v1806_v47, %s1873_s2  ;;  %v461_v47 = vrot.slane %v1987_v28, 2 }
 0x256   :  { %v226_v48 = vpop.permute.xlu0 %225 }
 0x257   :  { %v231_v50 = vmul.f32 %v226_v48, %v197_v33 }
 0x25a   :  { %v228_v49 = vpop.permute.xlu1 %227 }
 0x25b   :  { %v232_v51 = vmul.f32 %v228_v49, %v198_v37 }
 0x25d   :  { %v1996_v52 = vcombine.low %v231_v50, %v232_v51 }
 0x25f   :  { %v254_v53 = vrot.slane %v1996_v52, %v1976_v12 }
 0x261   :  { %v261_v54 = vrot.slane %v254_v53, %v1976_v12 }
 0x263   :  { %v263_v55 = vpack.c.bf16 %v261_v54, %v261_v54 }
 0x265   :  { %265 = vrot.lane.b32.xlu0 %v263_v55, %s1874_s3 }
 0x2d7   :  { %v266_v56 = vpop.permute.xlu0 %265 }
 0x2d8   :  { %1733 = vmatmul.mubr.msk.bf16.vlgmr.msra.gmra.mrb[4].mxu0 %vm66_vm1, %v266_v56 }
 0x2d9   :  { %1745 = vmatpush3.bf16.msra.mxu0 %v1937_v2  ;;  %1748 = vmatprep.mubr.msk.bf16.mxu0 %vm1870_vm0, %v1869_v0 }
 0x2da   :  { %1746 = vmatprep.subr.bf16.mxu0 %v1869_v0 }
 0x2dd   :  { %1747 = vmatpush3.bf16.msra.mxu0 %v1951_v4 }
 0x2de   :  { %1760 = vmatprep.subr.bf16.mxu0 %v1869_v0 }
 0x3ab   :  { %v304_v57 = vpop.f32.mrb[4].mxu0 }
 0x3ac   :  { %v323_v58 = vrot.slane %v304_v57, %v1976_v12  ;;  %v1734_v59 = vpop.f32.mrb[5].mxu0 }
 0x3ad   :  { %v307_v60 = vpop.f32.mrb[6].mxu0 }
 0x3ae   :  { %v324_v62 = vcombine.high %v323_v58, %v323_v58  ;;  %v331_v63 = vrot.slane %v323_v58, %v1976_v12  ;;  %v1735_v1 = vpop.f32.mrb[7].mxu0 }
 0x3b0   :  { %v338_v5 = vrot.slane %v324_v62, %v1976_v12  ;;  %v341_v6 = vadd.f32 %v331_v63, %v312_v61 }
 0x3b2   :  { %v342_v7 = vadd.f32 %v338_v5, %v313_v3  ;;  %1807 = vtanh.f32 %v341_v6 }
 0x3b4   :  { %1809 = vtanh.f32 %v342_v7 }
 0x3bc   :  { %v1808_v8 = vpop.eup %1807 }
 0x3bd   :  { %353 = vrot.lane.b32.xlu1 %v1808_v8, %s1873_s2  ;;  %v345_v10 = vmul.f32 0.5, %v1808_v8 }
 0x3be   :  { %v1810_v9 = vpop.eup %1809 }
 0x3bf   :  { %355 = vrot.lane.b32.xlu0 %v1810_v9, %s1873_s2  ;;  %v346_v13 = vmul.f32 0.5, %v1810_v9  ;;  %v347_v14 = vadd.f32 0.5, %v345_v10 }
 0x3c1   :  { %v348_v18 = vadd.f32 0.5, %v346_v13  ;;  %v349_v21 = vmul.f32 %v347_v14, %v219_v42 }
 0x3c3   :  { %v350_v24 = vmul.f32 %v348_v18, %v220_v45 }
 0x42f   :  { %v354_v15 = vpop.permute.xlu1 %353 }
 0x430   :  { %v359_v16 = vmul.f32 %v354_v15, %v347_v14 }
 0x431   :  { %v356_v19 = vpop.permute.xlu0 %355 }
 0x432   :  { %v360_v20 = vmul.f32 %v356_v19, %v348_v18  ;;  %363 = vrot.lane.b32.xlu1 %v359_v16, %s1874_s3 }
 0x434   :  { %365 = vrot.lane.b32.xlu0 %v360_v20, %s1874_s3 }
 0x4a4   :  { %v364_v22 = vpop.permute.xlu1 %363 }
 0x4a5   :  { %v369_v23 = vadd.f32 %v364_v22, %v349_v21 }
 0x4a6   :  { %v366_v25 = vpop.permute.xlu0 %365 }
 0x4a7   :  { %1811 = vtanh.f32 %v369_v23  ;;  %v370_v26 = vadd.f32 %v366_v25, %v350_v24  ;;  %v608_v25 = vrot.slane %v1981_v17, 3 }
 0x4a9   :  { %1813 = vtanh.f32 %v370_v26 }
 0x4b1   :  { %v1812_v27 = vpop.eup %1811 }
 0x4b2   :  { %375 = vrot.lane.b32.xlu1 %v1812_v27, %s1873_s2 }
 0x4b3   :  { %v1814_v29 = vpop.eup %1813 }
 0x4b4   :  { %377 = vrot.lane.b32.xlu0 %v1814_v29, %s1873_s2 }
 0x524   :  { %v376_v30 = vpop.permute.xlu1 %375 }
 0x525   :  { %v381_v32 = vmul.f32 %v376_v30, %v347_v14  ;;  %v609_v30 = vrot.slane %v1987_v28, 3 }
 0x526   :  { %v378_v31 = vpop.permute.xlu0 %377 }
 0x527   :  { %v382_v33 = vmul.f32 %v378_v31, %v348_v18 }
 0x529   :  { %v2020_v34 = vcombine.low %v381_v32, %v382_v33 }
 0x52b   :  { %v404_v35 = vrot.slane %v2020_v34, %v1976_v12 }
 0x52d   :  { %v411_v36 = vrot.slane %v404_v35, %v1976_v12 }
 0x52f   :  { %v413_v37 = vpack.c.bf16 %v411_v36, %v411_v36 }
 0x531   :  { %415 = vrot.lane.b32.xlu1 %v413_v37, %s1874_s3 }
 0x5a3   :  { %v416_v38 = vpop.permute.xlu1 %415 }
 0x5a4   :  { %1741 = vmatmul.mubr.msk.bf16.vlgmr.msra.gmra.mrb[4].mxu1 %vm66_vm1, %v416_v38 }
 0x5a5   :  { %1753 = vmatpush3.bf16.msra.mxu1 %v1937_v2  ;;  %1756 = vmatprep.mubr.msk.bf16.mxu1 %vm1870_vm0, %v1869_v0 }
 0x5a6   :  { %1754 = vmatprep.subr.bf16.mxu1 %v1869_v0 }
 0x5a9   :  { %1755 = vmatpush3.bf16.msra.mxu1 %v1951_v4 }
 0x5aa   :  { %1768 = vmatprep.subr.bf16.mxu1 %v1869_v0 }
 0x677   :  { %v454_v39 = vpop.f32.mrb[4].mxu1 }
 0x678   :  { %v471_v40 = vrot.slane %v454_v39, %v1976_v12  ;;  %v1742_v41 = vpop.f32.mrb[5].mxu1 }
 0x679   :  { %v457_v42 = vpop.f32.mrb[6].mxu1 }
 0x67a   :  { %v472_v44 = vcombine.high %v471_v40, %v471_v40  ;;  %v479_v45 = vrot.slane %v471_v40, %v1976_v12  ;;  %v1743_v46 = vpop.f32.mrb[7].mxu1 }
 0x67c   :  { %v486_v48 = vrot.slane %v472_v44, %v1976_v12  ;;  %v489_v49 = vadd.f32 %v479_v45, %v460_v43 }
 0x67e   :  { %v490_v50 = vadd.f32 %v486_v48, %v461_v47  ;;  %1815 = vtanh.f32 %v489_v49 }
 0x680   :  { %1817 = vtanh.f32 %v490_v50 }
 0x688   :  { %v1816_v51 = vpop.eup %1815 }
 0x689   :  { %501 = vrot.lane.b32.xlu0 %v1816_v51, %s1873_s2  ;;  %v493_v54 = vmul.f32 0.5, %v1816_v51 }
 0x68a   :  { %v1818_v53 = vpop.eup %1817 }
 0x68b   :  { %503 = vrot.lane.b32.xlu1 %v1818_v53, %s1873_s2  ;;  %v494_v55 = vmul.f32 0.5, %v1818_v53  ;;  %v495_v56 = vadd.f32 0.5, %v493_v54 }
 0x68d   :  { %v496_v59 = vadd.f32 0.5, %v494_v55  ;;  %v497_v62 = vmul.f32 %v495_v56, %v369_v23 }
 0x68f   :  { %v498_v3 = vmul.f32 %v496_v59, %v370_v26 }
 0x6fb   :  { %v502_v57 = vpop.permute.xlu0 %501 }
 0x6fc   :  { %v507_v58 = vmul.f32 %v502_v57, %v495_v56 }
 0x6fd   :  { %v504_v60 = vpop.permute.xlu1 %503 }
 0x6fe   :  { %v508_v61 = vmul.f32 %v504_v60, %v496_v59  ;;  %511 = vrot.lane.b32.xlu0 %v507_v58, %s1874_s3 }
 0x700   :  { %513 = vrot.lane.b32.xlu1 %v508_v61, %s1874_s3 }
 0x770   :  { %v512_v63 = vpop.permute.xlu0 %511 }
 0x771   :  { %v517_v1 = vadd.f32 %v512_v63, %v497_v62 }
 0x772   :  { %v514_v5 = vpop.permute.xlu1 %513 }
 0x773   :  { %1819 = vtanh.f32 %v517_v1  ;;  %v518_v6 = vadd.f32 %v514_v5, %v498_v3 }
 0x775   :  { %1821 = vtanh.f32 %v518_v6 }
 0x77d   :  { %v1820_v7 = vpop.eup %1819 }
 0x77e   :  { %523 = vrot.lane.b32.xlu0 %v1820_v7, %s1873_s2 }
 0x77f   :  { %v1822_v8 = vpop.eup %1821 }
 0x780   :  { %525 = vrot.lane.b32.xlu1 %v1822_v8, %s1873_s2 }
 0x7f0   :  { %v524_v9 = vpop.permute.xlu0 %523 }
 0x7f1   :  { %v529_v13 = vmul.f32 %v524_v9, %v495_v56 }
 0x7f2   :  { %v526_v10 = vpop.permute.xlu1 %525 }
 0x7f3   :  { %v530_v14 = vmul.f32 %v526_v10, %v496_v59  ;;  %v755_v10 = vrot.slane %v1987_v28, 4 }
 0x7f5   :  { %v2044_v15 = vcombine.low %v529_v13, %v530_v14 }
 0x7f7   :  { %v552_v16 = vrot.slane %v2044_v15, %v1976_v12 }
 0x7f9   :  { %v559_v18 = vrot.slane %v552_v16, %v1976_v12 }
 0x7fb   :  { %v561_v19 = vpack.c.bf16 %v559_v18, %v559_v18 }
 0x7fd   :  { %563 = vrot.lane.b32.xlu0 %v561_v19, %s1874_s3 }
 0x86f   :  { %v564_v20 = vpop.permute.xlu0 %563 }
 0x870   :  { %1749 = vmatmul.mubr.msk.bf16.vlgmr.msra.gmra.mrb[8].mxu0 %vm66_vm1, %v564_v20 }
 0x871   :  { %1761 = vmatpush3.bf16.msra.mxu0 %v1937_v2  ;;  %1764 = vmatprep.mubr.msk.bf16.mxu0 %vm1870_vm0, %v1869_v0 }
 0x872   :  { %1762 = vmatprep.subr.bf16.mxu0 %v1869_v0 }
 0x875   :  { %1763 = vmatpush3.bf16.msra.mxu0 %v1951_v4 }
 0x876   :  { %1776 = vmatprep.subr.bf16.mxu0 %v1869_v0 }
 0x943   :  { %v602_v21 = vpop.f32.mrb[8].mxu0 }
 0x944   :  { %v619_v22 = vrot.slane %v602_v21, %v1976_v12  ;;  %v1750_v23 = vpop.f32.mrb[9].mxu0 }
 0x945   :  { %v605_v24 = vpop.f32.mrb[10].mxu0 }
 0x946   :  { %v620_v26 = vcombine.high %v619_v22, %v619_v22  ;;  %v627_v27 = vrot.slane %v619_v22, %v1976_v12  ;;  %v1751_v29 = vpop.f32.mrb[11].mxu0 }
 0x948   :  { %v634_v31 = vrot.slane %v620_v26, %v1976_v12  ;;  %v637_v32 = vadd.f32 %v627_v27, %v608_v25 }
 0x94a   :  { %v638_v33 = vadd.f32 %v634_v31, %v609_v30  ;;  %1823 = vtanh.f32 %v637_v32 }
 0x94c   :  { %1825 = vtanh.f32 %v638_v33 }
 0x954   :  { %v1824_v35 = vpop.eup %1823 }
 0x955   :  { %649 = vrot.lane.b32.xlu1 %v1824_v35, %s1873_s2  ;;  %v641_v37 = vmul.f32 0.5, %v1824_v35 }
 0x956   :  { %v1826_v36 = vpop.eup %1825 }
 0x957   :  { %651 = vrot.lane.b32.xlu0 %v1826_v36, %s1873_s2  ;;  %v642_v38 = vmul.f32 0.5, %v1826_v36  ;;  %v643_v39 = vadd.f32 0.5, %v641_v37 }
 0x959   :  { %v644_v42 = vadd.f32 0.5, %v642_v38  ;;  %v645_v45 = vmul.f32 %v643_v39, %v517_v1 }
 0x95b   :  { %v646_v48 = vmul.f32 %v644_v42, %v518_v6  ;;  %v754_v6 = vrot.slane %v1981_v17, 4 }
 0x9c7   :  { %v650_v40 = vpop.permute.xlu1 %649 }
 0x9c8   :  { %v655_v41 = vmul.f32 %v650_v40, %v643_v39 }
 0x9c9   :  { %v652_v43 = vpop.permute.xlu0 %651 }
 0x9ca   :  { %v656_v44 = vmul.f32 %v652_v43, %v644_v42  ;;  %659 = vrot.lane.b32.xlu1 %v655_v41, %s1874_s3 }
 0x9cc   :  { %661 = vrot.lane.b32.xlu0 %v656_v44, %s1874_s3 }
 0xa3c   :  { %v660_v46 = vpop.permute.xlu1 %659 }
 0xa3d   :  { %v665_v47 = vadd.f32 %v660_v46, %v645_v45 }
 0xa3e   :  { %v662_v49 = vpop.permute.xlu0 %661 }
 0xa3f   :  { %1827 = vtanh.f32 %v665_v47  ;;  %v666_v50 = vadd.f32 %v662_v49, %v646_v48 }
 0xa41   :  { %1829 = vtanh.f32 %v666_v50 }
 0xa49   :  { %v1828_v51 = vpop.eup %1827 }
 0xa4a   :  { %671 = vrot.lane.b32.xlu1 %v1828_v51, %s1873_s2  ;;  %v901_v51 = vrot.slane %v1981_v17, 5 }
 0xa4b   :  { %v1830_v53 = vpop.eup %1829 }
 0xa4c   :  { %673 = vrot.lane.b32.xlu0 %v1830_v53, %s1873_s2 }
 0xabc   :  { %v672_v54 = vpop.permute.xlu1 %671 }
 0xabd   :  { %v677_v56 = vmul.f32 %v672_v54, %v643_v39 }
 0xabe   :  { %v674_v55 = vpop.permute.xlu0 %673 }
 0xabf   :  { %v678_v57 = vmul.f32 %v674_v55, %v644_v42 }
 0xac1   :  { %v2068_v58 = vcombine.low %v677_v56, %v678_v57 }
 0xac3   :  { %v698_v59 = vrot.slane %v2068_v58, %v1976_v12 }
 0xac5   :  { %v705_v60 = vrot.slane %v698_v59, %v1976_v12 }
 0xac7   :  { %v707_v61 = vpack.c.bf16 %v705_v60, %v705_v60 }
 0xac9   :  { %709 = vrot.lane.b32.xlu1 %v707_v61, %s1874_s3 }
 0xb3b   :  { %v710_v62 = vpop.permute.xlu1 %709 }
 0xb3c   :  { %1757 = vmatmul.mubr.msk.bf16.vlgmr.msra.gmra.mrb[8].mxu1 %vm66_vm1, %v710_v62 }
 0xb3d   :  { %1769 = vmatpush3.bf16.msra.mxu1 %v1937_v2  ;;  %1772 = vmatprep.mubr.msk.bf16.mxu1 %vm1870_vm0, %v1869_v0 }
 0xb3e   :  { %1770 = vmatprep.subr.bf16.mxu1 %v1869_v0 }
 0xb41   :  { %1771 = vmatpush3.bf16.msra.mxu1 %v1951_v4 }
 0xc0f   :  { %v748_v63 = vpop.f32.mrb[8].mxu1 }
 0xc10   :  { %v765_v1 = vrot.slane %v748_v63, %v1976_v12  ;;  %v1758_v3 = vpop.f32.mrb[9].mxu1 }
 0xc11   :  { %v751_v5 = vpop.f32.mrb[10].mxu1 }
 0xc12   :  { %v766_v7 = vcombine.high %v765_v1, %v765_v1  ;;  %v773_v8 = vrot.slane %v765_v1, %v1976_v12  ;;  %v1759_v9 = vpop.f32.mrb[11].mxu1 }
 0xc14   :  { %v780_v13 = vrot.slane %v766_v7, %v1976_v12  ;;  %v783_v14 = vadd.f32 %v773_v8, %v754_v6 }
 0xc16   :  { %v784_v16 = vadd.f32 %v780_v13, %v755_v10  ;;  %1831 = vtanh.f32 %v783_v14 }
 0xc18   :  { %1833 = vtanh.f32 %v784_v16 }
 0xc20   :  { %v1832_v18 = vpop.eup %1831 }
 0xc21   :  { %795 = vrot.lane.b32.xlu0 %v1832_v18, %s1873_s2  ;;  %v787_v20 = vmul.f32 0.5, %v1832_v18 }
 0xc22   :  { %v1834_v19 = vpop.eup %1833 }
 0xc23   :  { %797 = vrot.lane.b32.xlu1 %v1834_v19, %s1873_s2  ;;  %v788_v21 = vmul.f32 0.5, %v1834_v19  ;;  %v789_v22 = vadd.f32 0.5, %v787_v20 }
 0xc25   :  { %v790_v25 = vadd.f32 0.5, %v788_v21  ;;  %v791_v29 = vmul.f32 %v789_v22, %v665_v47 }
 0xc27   :  { %v792_v32 = vmul.f32 %v790_v25, %v666_v50 }
 0xc93   :  { %v796_v23 = vpop.permute.xlu0 %795 }
 0xc94   :  { %v801_v24 = vmul.f32 %v796_v23, %v789_v22 }
 0xc95   :  { %v798_v26 = vpop.permute.xlu1 %797 }
 0xc96   :  { %v802_v27 = vmul.f32 %v798_v26, %v790_v25  ;;  %805 = vrot.lane.b32.xlu0 %v801_v24, %s1874_s3 }
 0xc98   :  { %807 = vrot.lane.b32.xlu1 %v802_v27, %s1874_s3 }
 0xd08   :  { %v806_v30 = vpop.permute.xlu0 %805 }
 0xd09   :  { %v811_v31 = vadd.f32 %v806_v30, %v791_v29 }
 0xd0a   :  { %v808_v33 = vpop.permute.xlu1 %807 }
 0xd0b   :  { %1835 = vtanh.f32 %v811_v31  ;;  %v812_v35 = vadd.f32 %v808_v33, %v792_v32  ;;  %v1048_v33 = vrot.slane %v1981_v17, 6 }
 0xd0d   :  { %1837 = vtanh.f32 %v812_v35 }
 0xd15   :  { %v1836_v36 = vpop.eup %1835 }
 0xd16   :  { %817 = vrot.lane.b32.xlu0 %v1836_v36, %s1873_s2 }
 0xd17   :  { %v1838_v37 = vpop.eup %1837 }
 0xd18   :  { %819 = vrot.lane.b32.xlu1 %v1838_v37, %s1873_s2 }
 0xd88   :  { %v818_v38 = vpop.permute.xlu0 %817 }
 0xd89   :  { %v823_v40 = vmul.f32 %v818_v38, %v789_v22  ;;  %v1049_v38 = vrot.slane %v1987_v28, 6 }
 0xd8a   :  { %v820_v39 = vpop.permute.xlu1 %819 }
 0xd8b   :  { %v824_v41 = vmul.f32 %v820_v39, %v790_v25 }
 0xd8d   :  { %v2091_v42 = vcombine.low %v823_v40, %v824_v41 }
 0xd8f   :  { %v845_v43 = vrot.slane %v2091_v42, %v1976_v12 }
 0xd91   :  { %v852_v44 = vrot.slane %v845_v43, %v1976_v12 }
 0xd93   :  { %v854_v45 = vpack.c.bf16 %v852_v44, %v852_v44 }
 0xd95   :  { %856 = vrot.lane.b32.xlu0 %v854_v45, %s1874_s3 }
 0xe07   :  { %v857_v46 = vpop.permute.xlu0 %856 }
 0xe08   :  { %1765 = vmatmul.mubr.msk.bf16.vlgmr.msra.gmra.mrb[12].mxu0 %vm66_vm1, %v857_v46 }
 0xe09   :  { %1777 = vmatpush3.bf16.msra.mxu0 %v1937_v2  ;;  %1780 = vmatprep.mubr.msk.bf16.mxu0 %vm1870_vm0, %v1869_v0  ;;  %v902_v2 = vrot.slane %v1987_v28, 5 }
 0xe0a   :  { %1778 = vmatprep.subr.bf16.mxu0 %v1869_v0 }
 0xe0d   :  { %1779 = vmatpush3.bf16.msra.mxu0 %v1951_v4 }
 0xedb   :  { %v895_v47 = vpop.f32.mrb[12].mxu0 }
 0xedc   :  { %v912_v48 = vrot.slane %v895_v47, %v1976_v12  ;;  %v1766_v49 = vpop.f32.mrb[13].mxu0 }
 0xedd   :  { %v898_v50 = vpop.f32.mrb[14].mxu0 }
 0xede   :  { %v913_v53 = vcombine.high %v912_v48, %v912_v48  ;;  %v920_v54 = vrot.slane %v912_v48, %v1976_v12  ;;  %v1767_v55 = vpop.f32.mrb[15].mxu0 }
 0xee0   :  { %v927_v56 = vrot.slane %v913_v53, %v1976_v12  ;;  %v930_v57 = vadd.f32 %v920_v54, %v901_v51 }
 0xee2   :  { %v931_v59 = vadd.f32 %v927_v56, %v902_v2  ;;  %1839 = vtanh.f32 %v930_v57 }
 0xee4   :  { %1841 = vtanh.f32 %v931_v59 }
 0xeec   :  { %v1840_v0 = vpop.eup %1839 }
 0xeed   :  { %942 = vrot.lane.b32.xlu1 %v1840_v0, %s1873_s2  ;;  %v934_v60 = vmul.f32 0.5, %v1840_v0 }
 0xeee   :  { %v1842_v4 = vpop.eup %1841 }
 0xeef   :  { %944 = vrot.lane.b32.xlu0 %v1842_v4, %s1873_s2  ;;  %v935_v61 = vmul.f32 0.5, %v1842_v4  ;;  %v936_v62 = vadd.f32 0.5, %v934_v60 }
 0xef1   :  { %v937_v3 = vadd.f32 0.5, %v935_v61  ;;  %v938_v7 = vmul.f32 %v936_v62, %v811_v31 }
 0xef3   :  { %v939_v10 = vmul.f32 %v937_v3, %v812_v35 }
 0xf5f   :  { %v943_v63 = vpop.permute.xlu1 %942 }
 0xf60   :  { %v948_v1 = vmul.f32 %v943_v63, %v936_v62 }
 0xf61   :  { %v945_v5 = vpop.permute.xlu0 %944 }
 0xf62   :  { %v949_v6 = vmul.f32 %v945_v5, %v937_v3  ;;  %952 = vrot.lane.b32.xlu1 %v948_v1, %s1874_s3 }
 0xf64   :  { %954 = vrot.lane.b32.xlu0 %v949_v6, %s1874_s3 }
 0xfd4   :  { %v953_v8 = vpop.permute.xlu1 %952 }
 0xfd5   :  { %v958_v9 = vadd.f32 %v953_v8, %v938_v7 }
 0xfd6   :  { %v955_v13 = vpop.permute.xlu0 %954 }
 0xfd7   :  { %1843 = vtanh.f32 %v958_v9  ;;  %v959_v14 = vadd.f32 %v955_v13, %v939_v10 }
 0xfd9   :  { %1845 = vtanh.f32 %v959_v14 }
 0xfe1   :  { %v1844_v16 = vpop.eup %1843 }
 0xfe2   :  { %964 = vrot.lane.b32.xlu1 %v1844_v16, %s1873_s2 }
 0xfe3   :  { %v1846_v18 = vpop.eup %1845 }
 0xfe4   :  { %966 = vrot.lane.b32.xlu0 %v1846_v18, %s1873_s2 }
0x1054   :  { %v965_v19 = vpop.permute.xlu1 %964 }
0x1055   :  { %v970_v21 = vmul.f32 %v965_v19, %v936_v62 }
0x1056   :  { %v967_v20 = vpop.permute.xlu0 %966 }
0x1057   :  { %v971_v22 = vmul.f32 %v967_v20, %v937_v3  ;;  %v1196_v20 = vrot.slane %v1987_v28, 7 }
0x1059   :  { %v2114_v23 = vcombine.low %v970_v21, %v971_v22 }
0x105b   :  { %v992_v24 = vrot.slane %v2114_v23, %v1976_v12 }
0x105d   :  { %v999_v25 = vrot.slane %v992_v24, %v1976_v12 }
0x105f   :  { %v1001_v26 = vpack.c.bf16 %v999_v25, %v999_v25 }
0x1061   :  { %1003 = vrot.lane.b32.xlu1 %v1001_v26, %s1874_s3 }
0x10d3   :  { %v1004_v27 = vpop.permute.xlu1 %1003 }
0x10d4   :  { %1773 = vmatmul.mubr.msk.bf16.vlgmr.msra.gmra.mrb[12].mxu1 %vm66_vm1, %v1004_v27 }
0x11a7   :  { %v1042_v29 = vpop.f32.mrb[12].mxu1 }
0x11a8   :  { %v1059_v30 = vrot.slane %v1042_v29, %v1976_v12  ;;  %v1774_v31 = vpop.f32.mrb[13].mxu1 }
0x11a9   :  { %v1045_v32 = vpop.f32.mrb[14].mxu1 }
0x11aa   :  { %v1060_v35 = vcombine.high %v1059_v30, %v1059_v30  ;;  %v1067_v36 = vrot.slane %v1059_v30, %v1976_v12  ;;  %v1775_v37 = vpop.f32.mrb[15].mxu1 }
0x11ac   :  { %v1074_v39 = vrot.slane %v1060_v35, %v1976_v12  ;;  %v1077_v40 = vadd.f32 %v1067_v36, %v1048_v33 }
0x11ae   :  { %v1078_v41 = vadd.f32 %v1074_v39, %v1049_v38  ;;  %1847 = vtanh.f32 %v1077_v40 }
0x11b0   :  { %1849 = vtanh.f32 %v1078_v41 }
0x11b8   :  { %v1848_v43 = vpop.eup %1847 }
0x11b9   :  { %1089 = vrot.lane.b32.xlu0 %v1848_v43, %s1873_s2  ;;  %v1081_v45 = vmul.f32 0.5, %v1848_v43 }
0x11ba   :  { %v1850_v44 = vpop.eup %1849 }
0x11bb   :  { %1091 = vrot.lane.b32.xlu1 %v1850_v44, %s1873_s2  ;;  %v1082_v46 = vmul.f32 0.5, %v1850_v44  ;;  %v1083_v47 = vadd.f32 0.5, %v1081_v45 }
0x11bd   :  { %v1084_v50 = vadd.f32 0.5, %v1082_v46  ;;  %v1085_v54 = vmul.f32 %v1083_v47, %v958_v9 }
0x11bf   :  { %v1086_v56 = vmul.f32 %v1084_v50, %v959_v14  ;;  %v1195_v14 = vrot.slane %v1981_v17, 7 }
0x122b   :  { %v1090_v48 = vpop.permute.xlu0 %1089 }
0x122c   :  { %v1095_v49 = vmul.f32 %v1090_v48, %v1083_v47  ;;  %v1875_v48 = vmov 1935823168  }
0x122d   :  { %v1092_v51 = vpop.permute.xlu1 %1091 }
0x122e   :  { %v1096_v53 = vmul.f32 %v1092_v51, %v1084_v50  ;;  %1099 = vrot.lane.b32.xlu0 %v1095_v49, %s1874_s3  ;;  %v237_v49 = vunpack.c.l.s4 %v1875_v48 }
0x1230   :  { %1101 = vrot.lane.b32.xlu1 %v1096_v53, %s1874_s3 }
0x12a0   :  { %v1100_v55 = vpop.permute.xlu0 %1099 }
0x12a1   :  { %v1105_v2 = vadd.f32 %v1100_v55, %v1085_v54  ;;  %v238_v54 = vunpack.c.0.s8 %v237_v49 }
0x12a2   :  { %v1102_v57 = vpop.permute.xlu1 %1101 }
0x12a3   :  { %1851 = vtanh.f32 %v1105_v2  ;;  %v1106_v59 = vadd.f32 %v1102_v57, %v1086_v56  ;;  %v241_v56 = vsub.s32 %v238_v54, %v1973_v11 }
0x12a5   :  { %1853 = vtanh.f32 %v1106_v59 }
0x12ad   :  { %v1852_v0 = vpop.eup %1851 }
0x12ae   :  { %1111 = vrot.lane.b32.xlu0 %v1852_v0, %s1873_s2  ;;  %v834_v0 = vrot.slane %v2091_v42, %v241_v56 }
0x12af   :  { %v1854_v4 = vpop.eup %1853 }
0x12b0   :  { %1113 = vrot.lane.b32.xlu1 %v1854_v4, %s1873_s2  ;;  %v392_v4 = vrot.slane %v2020_v34, %v241_v56 }
0x1320   :  { %v1112_v60 = vpop.permute.xlu0 %1111 }
0x1321   :  { %v1117_v62 = vmul.f32 %v1112_v60, %v1083_v47  ;;  %v981_v60 = vrot.slane %v2114_v23, %v241_v56 }
0x1322   :  { %v1114_v61 = vpop.permute.xlu1 %1113 }
0x1323   :  { %v1118_v63 = vmul.f32 %v1114_v61, %v1084_v50  ;;  %v540_v61 = vrot.slane %v2044_v15, %v241_v56 }
0x1325   :  { %v2132_v1 = vcombine.low %v1117_v62, %v1118_v63 }
0x1327   :  { %v1139_v3 = vrot.slane %v2132_v1, %v1976_v12 }
0x1329   :  { %v1146_v5 = vrot.slane %v1139_v3, %v1976_v12 }
0x132b   :  { %v1148_v6 = vpack.c.bf16 %v1146_v5, %v1146_v5  ;;  %v688_v5 = vrot.slane %v2068_v58, %v241_v56  ;;  %v2209_v58 = vsub.s32 0, %v1973_v11 }
0x132d   :  { %1150 = vrot.lane.b32.xlu0 %v1148_v6, %s1874_s3 }
0x139f   :  { %v1151_v7 = vpop.permute.xlu0 %1150 }
0x13a0   :  { %1781 = vmatmul.mubr.msk.bf16.vlgmr.msra.gmra.mrb[16].mxu0 %vm66_vm1, %v1151_v7 }
0x1473   :  { %v1189_v8 = vpop.f32.mrb[16].mxu0 }
0x1474   :  { %v1206_v9 = vrot.slane %v1189_v8, %v1976_v12  ;;  %v1782_v10 = vpop.f32.mrb[17].mxu0 }
0x1475   :  { %v1192_v13 = vpop.f32.mrb[18].mxu0 }
0x1476   :  { %v1207_v16 = vcombine.high %v1206_v9, %v1206_v9  ;;  %v1214_v18 = vrot.slane %v1206_v9, %v1976_v12  ;;  %v1783_v19 = vpop.f32.mrb[19].mxu0  ;;  %v2212_v9 = vsub.s32 1, %v1973_v11 }
0x1478   :  { %v1221_v21 = vrot.slane %v1207_v16, %v1976_v12  ;;  %v1224_v22 = vadd.f32 %v1214_v18, %v1195_v14 }
0x147a   :  { %v1225_v24 = vadd.f32 %v1221_v21, %v1196_v20  ;;  %1855 = vtanh.f32 %v1224_v22 }
0x147c   :  { %1857 = vtanh.f32 %v1225_v24 }
0x1484   :  { %v1856_v25 = vpop.eup %1855 }
0x1485   :  { %1236 = vrot.lane.b32.xlu1 %v1856_v25, %s1873_s2  ;;  %v1228_v27 = vmul.f32 0.5, %v1856_v25 }
0x1486   :  { %v1858_v26 = vpop.eup %1857 }
0x1487   :  { %1238 = vrot.lane.b32.xlu0 %v1858_v26, %s1873_s2  ;;  %v1229_v17 = vmul.f32 0.5, %v1858_v26  ;;  %v1230_v29 = vadd.f32 0.5, %v1228_v27  ;;  %v1683_v27 = vld [vmem:[%s2318_s6] ss:$0 sm:$0xff] }
0x1489   :  { %v1231_v32 = vadd.f32 0.5, %v1229_v17  ;;  %v1232_v35 = vmul.f32 %v1230_v29, %v1105_v2 }
0x148b   :  { %v1233_v38 = vmul.f32 %v1231_v32, %v1106_v59  ;;  %v242_v59 = vrot.slane %v1996_v52, %v241_v56  ;;  %v1128_v52 = vrot.slane %v2132_v1, %v241_v56 }
0x14f7   :  { %v1237_v30 = vpop.permute.xlu1 %1236 }
0x14f8   :  { %v1242_v31 = vmul.f32 %v1237_v30, %v1230_v29 }
0x14f9   :  { %v1239_v33 = vpop.permute.xlu0 %1238 }
0x14fa   :  { %v1243_v28 = vmul.f32 %v1239_v33, %v1231_v32  ;;  %1246 = vrot.lane.b32.xlu1 %v1242_v31, %s1874_s3 }
0x14fc   :  { %1248 = vrot.lane.b32.xlu0 %v1243_v28, %s1874_s3  ;;  %v1468_v28 = vrot.slane %v1683_v27, %v1976_v12 }
0x156c   :  { %v1247_v36 = vpop.permute.xlu1 %1246 }
0x156d   :  { %v2148_v37 = vadd.f32 %v1247_v36, %v1232_v35 }
0x156e   :  { %v1249_v39 = vpop.permute.xlu0 %1248 }
0x156f   :  { %1859 = vtanh.f32 %v2148_v37  ;;  %v2151_v40 = vadd.f32 %v1249_v39, %v1233_v38  ;;  %v1469_v38 = vcombine.high %v1468_v28, %v1468_v28  ;;  %v1684_v39 = vld [vmem:[%s2319_s7] ss:$0 sm:$0xff] }
0x1571   :  { %1861 = vtanh.f32 %v2151_v40  ;;  %v1550_v50 = vcombine.low %v2148_v37, %v2151_v40 }
0x1573   :  { %v1557_v2 = vrot.slane %v1550_v50, %v1976_v12 }
0x1575   :  { %v1564_v57 = vrot.slane %v1557_v2, %v1976_v12  ;;  %v1476_v2 = vrot.slane %v1468_v28, %v1976_v12 }
0x1579   :  { %v1860_v41 = vpop.eup %1859 }
0x157a   :  { %1258 = vrot.lane.b32.xlu1 %v1860_v41, %s1873_s2  ;;  %v1483_v41 = vrot.slane %v1469_v38, %v1976_v12 }
0x157b   :  { %v1862_v43 = vpop.eup %1861 }
0x157c   :  { %1260 = vrot.lane.b32.xlu0 %v1862_v43, %s1873_s2  ;;  %v1503_v43 = vrot.slane %v1684_v39, %v1976_v12 }
0x15ec   :  { %v1259_v44 = vpop.permute.xlu1 %1258 }
0x15ed   :  { %v1264_v46 = vmul.f32 %v1259_v44, %v1230_v29  ;;  %v1877_v44 = vmov 1983009808  }
0x15ee   :  { %v1261_v45 = vpop.permute.xlu0 %1260 }
0x15ef   :  { %v1265_v47 = vmul.f32 %v1261_v45, %v1231_v32  ;;  %v1281_v45 = vunpack.c.l.s4 %v1877_v44 }
0x15f1   :  { %v1268_v51 = vcombine.low %v1264_v46, %v1265_v47 }
0x15f3   :  { %v1387_v53 = vrot.slane %v1268_v51, %v1976_v12  ;;  %v1275_v7 = vrot.slane %v1268_v51, %v241_v56 }
0x15f5   :  { %v1394_v55 = vrot.slane %v1387_v53, %v1976_v12 }
0x15f7   :  { %1395 = vrot.lane.b32.xlu1 %v1394_v55, %s1874_s3 }
0x15fb   :  { %1565 = vrot.lane.b32.xlu1 %v1564_v57, %s1876_s19 }
0x15ff   :  { %243 = vrot.lane.b32.xlu1 %v242_v59, %s1874_s3  ;;  %v1504_v59 = vcombine.high %v1503_v43, %v1503_v43 }
0x1603   :  { %835 = vrot.lane.b32.xlu1 %v834_v0, %s1874_s3  ;;  %v1518_v0 = vrot.slane %v1504_v59, %v1976_v12 }
0x1607   :  { %393 = vrot.lane.b32.xlu1 %v392_v4, %s1873_s2  ;;  %v1878_v4 = vmov 269488144  }
0x160b   :  { %982 = vrot.lane.b32.xlu1 %v981_v60, %s1873_s2  ;;  %v1300_v60 = vunpack.c.l.s4 %v1878_v4 }
0x160f   :  { %541 = vrot.lane.b32.xlu1 %v540_v61, %s1876_s19 }
0x1613   :  { %1129 = vrot.lane.b32.xlu1 %v1128_v52, %s1876_s19  ;;  %v1301_v52 = vunpack.c.0.s8 %v1300_v60 }
0x1669   :  { %v1396_v42 = vpop.permute.xlu1 %1395 }
0x166a   :  { %v1398_v62 = vsel %vm246_vm2, %v1396_v42, 0.0 }
0x166b   :  { %1399 = vadd.xlane.f32.xlu0 %v1398_v62  ;;  %v1304_v62 = vsub.s32 %v1301_v52, %v1973_v11 }
0x166d   :  { %v1566_v34 = vpop.permute.xlu1 %1565 }
0x166e   :  { %v1568_v63 = vsel %vm246_vm2, %v1566_v34, 0.0 }
0x166f   :  { %1569 = vadd.xlane.f32.xlu1 %v1568_v63 }
0x1671   :  { %v244_v23 = vpop.permute.xlu1 %243 }
0x1672   :  { %247 = vst.msk [vmem:[%s2317_s8] sm:$0x3] %vm246_vm2, %v244_v23 }
0x1675   :  { %v836_v15 = vpop.permute.xlu1 %835 }
0x1676   :  { %838 = vst.msk [vmem:[%s2317_s8 + $0x2] sm:$0x3] %vm246_vm2, %v836_v15 }
0x1679   :  { %v394_v1 = vpop.permute.xlu1 %393 }
0x167a   :  { %397 = vst.msk [vmem:[%s2317_s8] sm:$0x3] %vm396_vm3, %v394_v1 }
0x167d   :  { %v983_v3 = vpop.permute.xlu1 %982 }
0x167e   :  { %985 = vst.msk [vmem:[%s2317_s8 + $0x2] sm:$0x3] %vm396_vm3, %v983_v3 }
0x1681   :  { %v542_v6 = vpop.permute.xlu1 %541 }
0x1682   :  { %545 = vst.msk [vmem:[%s2317_s8] sm:$0x3] %vm544_vm4, %v542_v6 }
0x1683   :  { %691 = vst.msk [vmem:[%s2317_s8] sm:$0x3] %vm690_vm5, %v688_v5 }
0x1685   :  { %v1130_v8 = vpop.permute.xlu1 %1129 }
0x1686   :  { %1132 = vst.msk [vmem:[%s2317_s8 + $0x2] sm:$0x3] %vm544_vm4, %v1130_v8 }
0x1687   :  { %1277 = vst.msk [vmem:[%s2317_s8 + $0x2] sm:$0x3] %vm690_vm5, %v1275_v7 }
0x168e   :  { %v1278_v49 = vld [vmem:[%s2317_s8] sm:$0xf] }
0x16f8   :  { %v1400_v10 = vpop.xlane.xlu0 %1399 }
0x16f9   :  { %v1402_v13 = vmul.f32 0.03125, %v1400_v10 }
0x16fb   :  { %v1407_v14 = vrot.slane %v1402_v13, %v2209_v58  ;;  %v1411_v16 = vrot.slane %v1402_v13, %v2212_v9 }
0x16fc   :  { %v1570_v18 = vpop.xlane.xlu1 %1569 }
0x16fd   :  { %v2216_v19 = vsub.f32 %v1264_v46, %v1407_v14  ;;  %v2218_v20 = vsub.f32 %v1265_v47, %v1411_v16  ;;  %v1571_v21 = vmul.f32 0.03125, %v1570_v18  ;;  %v1511_v46 = vrot.slane %v1503_v43, %v1976_v12 }
0x16fe   :  { %v1282_v47 = vunpack.c.0.s8 %v1281_v45 }
0x16ff   :  { %v1416_v22 = vmul.f32 %v2216_v19, %v2216_v19  ;;  %v1417_v24 = vmul.f32 %v2218_v20, %v2218_v20  ;;  %v1576_v25 = vrot.slane %v1571_v21, %v2209_v58  ;;  %v1580_v26 = vrot.slane %v1571_v21, %v2212_v9 }
0x1700   :  { %v2255_v48 = vsub.s32 %v1282_v47, %v1973_v11 }
0x1701   :  { %v2230_v17 = vsub.f32 %v2148_v37, %v1576_v25  ;;  %v2233_v29 = vsub.f32 %v2151_v40, %v1580_v26  ;;  %v1420_v30 = vcombine.low %v1416_v22, %v1417_v24 }
0x1702   :  { %v1286_v50 = vrot.slane %v1278_v49, %v2255_v48 }
0x1703   :  { %v1585_v31 = vmul.f32 %v2230_v17, %v2230_v17  ;;  %v1586_v32 = vmul.f32 %v2233_v29, %v2233_v29  ;;  %v1427_v33 = vrot.slane %v1420_v30, %v1976_v12 }
0x1704   :  { %v1287_v51 = vcombine.high %v1286_v50, %v1286_v50  ;;  %v1291_v54 = vsel %vm1290_vm6, %v1286_v50, 0.0 }
0x1705   :  { %v1434_v35 = vrot.slane %v1427_v33, %v1976_v12  ;;  %v1589_v36 = vcombine.low %v1585_v31, %v1586_v32 }
0x1706   :  { %v1292_v53 = vsel %vm1290_vm6, %v1287_v51, 0.0 }
0x1707   :  { %1435 = vrot.lane.b32.xlu0 %v1434_v35, %s1874_s3  ;;  %v1596_v37 = vrot.slane %v1589_v36, %v1976_v12  ;;  %v1293_v55 = vadd.f32 %v1292_v53, %v1291_v54 }
0x1709   :  { %v1603_v40 = vrot.slane %v1596_v37, %v1976_v12 }
0x170b   :  { %1604 = vrot.lane.b32.xlu1 %v1603_v40, %s1876_s19 }
0x170f   :  { %1486 = vrot.lane.b32.xlu1 %v1483_v41, %s1876_s19 }
0x1713   :  { %1519 = vrot.lane.b32.xlu1 %v1511_v46, %s1876_s19 }
0x1726   :  { %1294 = vadd.xlane.f32.xlu0 %v1293_v55 }
0x173c   :  { %1484 = vrot.lane.b32.xlu0 %v1476_v2, %s1876_s19 }
0x1779   :  { %v1436_v56 = vpop.permute.xlu0 %1435 }
0x177a   :  { %v1438_v57 = vsel %vm246_vm2, %v1436_v56, 0.0 }
0x177b   :  { %1439 = vadd.xlane.f32.xlu1 %v1438_v57 }
0x177d   :  { %v1605_v61 = vpop.permute.xlu1 %1604 }
0x177e   :  { %v1607_v42 = vsel %vm246_vm2, %v1605_v61, 0.0 }
0x1781   :  { %v1487_v11 = vpop.permute.xlu1 %1486 }
0x1785   :  { %v1520_v10 = vpop.permute.xlu1 %1519 }
0x178c   :  { %1521 = vrot.lane.b32.xlu1 %v1518_v0, %s1876_s19 }
0x17b0   :  { %1608 = vadd.xlane.f32.xlu1 %v1607_v42 }
0x17b3   :  { %v1295_v34 = vpop.xlane.xlu0 %1294 }
0x17b4   :  { %v1297_v63 = vmul.f32 0.00390625, %v1295_v34 }
0x17b6   :  { %v1305_v23 = vrot.slane %v1297_v63, %v1304_v62 }
0x17b7   :  { %v1485_v24 = vpop.permute.xlu0 %1484 }
0x17b8   :  { %v1307_v15 = vsub.f32 %v1278_v49, %v1305_v23 }
0x17ba   :  { %v1308_v1 = vmul.f32 %v1307_v15, %v1307_v15 }
0x17bc   :  { %v1316_v3 = vrot.slane %v1308_v1, %v2255_v48 }
0x17be   :  { %v1317_v5 = vcombine.high %v1316_v3, %v1316_v3  ;;  %v1320_v6 = vsel %vm1290_vm6, %v1316_v3, 0.0 }
0x17c0   :  { %v1321_v7 = vsel %vm1290_vm6, %v1317_v5, 0.0 }
0x17c1   :  { %v1322_v8 = vadd.f32 %v1321_v7, %v1320_v6  ;;  %1626 = vrot.lane.b32.xlu1 %v1476_v2, %s1874_s3 }
0x17c3   :  { %1323 = vadd.xlane.f32.xlu0 %v1322_v8 }
0x17c5   :  { %1634 = vrot.lane.b32.xlu1 %v1511_v46, %s1874_s3 }
0x17c9   :  { %1636 = vrot.lane.b32.xlu1 %v1518_v0, %s1874_s3 }
0x17d9   :  { %1628 = vrot.lane.b32.xlu0 %v1483_v41, %s1874_s3 }
0x1808   :  { %v1440_v13 = vpop.xlane.xlu1 %1439 }
0x1809   :  { %v1441_v14 = vmul.f32 0.03125, %v1440_v13 }
0x180b   :  { %v1442_v16 = vadd.f32 1e-05, %v1441_v14 }
0x180c   :  { %v1522_v27 = vpop.permute.xlu1 %1521 }
0x180d   :  { %1863 = vrsqrt.f32 %v1442_v16 }
0x1817   :  { %v1864_v18 = vpop.eup %1863 }
0x1818   :  { %v1448_v21 = vrot.slane %v1864_v18, %v2209_v58  ;;  %v1452_v22 = vrot.slane %v1864_v18, %v2212_v9 }
0x181a   :  { %v1455_v25 = vmul.f32 %v1448_v21, %v2216_v19  ;;  %v1456_v26 = vmul.f32 %v1452_v22, %v2218_v20  ;;  %v1338_v19 = vld [vmem:[%s2320_s4] sm:$0x3] }
0x181b   :  { %v1358_v20 = vld [vmem:[%s2321_s5] sm:$0x3]  ;;  %v1343_v40 = vrot.slane %v1338_v19, %v2209_v58  ;;  %v1347_v41 = vrot.slane %v1338_v19, %v2212_v9 }
0x181c   :  { %v1490_v30 = vmul.f32 %v1485_v24, %v1455_v25  ;;  %v1491_v31 = vmul.f32 %v1487_v11, %v1456_v26  ;;  %v1363_v43 = vrot.slane %v1358_v20, %v2209_v58  ;;  %v1367_v44 = vrot.slane %v1358_v20, %v2212_v9 }
0x181d   :  { %v1348_v45 = vcombine.low %v1343_v40, %v1347_v41 }
0x181e   :  { %v1525_v32 = vadd.f32 %v1520_v10, %v1490_v30  ;;  %v1526_v33 = vadd.f32 %v1522_v27, %v1491_v31  ;;  %v1368_v46 = vcombine.low %v1363_v43, %v1367_v44 }
0x181f   :  { %v1355_v49 = vrot.slane %v1348_v45, %v2255_v48 }
0x1820   :  { %v1529_v28 = vcombine.low %v1525_v32, %v1526_v33  ;;  %v1375_v51 = vrot.slane %v1368_v46, %v2255_v48 }
0x1822   :  { %v1536_v35 = vrot.slane %v1529_v28, %v1976_v12 }
0x1824   :  { %v1543_v36 = vrot.slane %v1536_v35, %v1976_v12 }
0x1826   :  { %1544 = vrot.lane.b32.xlu1 %v1543_v36, %s1874_s3 }
0x183d   :  { %v1609_v2 = vpop.xlane.xlu1 %1608 }
0x183e   :  { %v1610_v56 = vmul.f32 0.03125, %v1609_v2 }
0x1840   :  { %v1611_v57 = vadd.f32 1e-05, %v1610_v56 }
0x1841   :  { %v1627_v59 = vpop.permute.xlu1 %1626 }
0x1845   :  { %v1635_v61 = vpop.permute.xlu1 %1634 }
0x1849   :  { %v1637_v34 = vpop.permute.xlu1 %1636 }
0x1850   :  { %v1324_v37 = vpop.xlane.xlu0 %1323 }
0x1851   :  { %v1325_v38 = vmul.f32 0.00390625, %v1324_v37 }
0x1853   :  { %v1326_v39 = vadd.f32 1e-05, %v1325_v38 }
0x1854   :  { %v1629_v52 = vpop.permute.xlu0 %1628 }
0x1855   :  { %1865 = vrsqrt.f32 %v1326_v39 }
0x1856   :  { %1867 = vrsqrt.f32 %v1611_v57 }
0x185f   :  { %v1866_v47 = vpop.eup %1865 }
0x1860   :  { %v1335_v50 = vrot.slane %v1866_v47, %v1304_v62  ;;  %v1868_v0 = vpop.eup %1867 }
0x1861   :  { %v1617_v4 = vrot.slane %v1868_v0, %v2209_v58  ;;  %v1621_v60 = vrot.slane %v1868_v0, %v2212_v9 }
0x1862   :  { %v1337_v53 = vmul.f32 %v1335_v50, %v1307_v15 }
0x1863   :  { %v1624_v48 = vmul.f32 %v1617_v4, %v2230_v17  ;;  %v1625_v42 = vmul.f32 %v1621_v60, %v2233_v29 }
0x1864   :  { %v1357_v54 = vmul.f32 %v1355_v49, %v1337_v53 }
0x1865   :  { %v1633_v62 = vmul.f32 %v1629_v52, %v1625_v42  ;;  %v1632_v63 = vmul.f32 %v1627_v59, %v1624_v48 }
0x1866   :  { %v1377_v55 = vadd.f32 %v1375_v51, %v1357_v54 }
0x1867   :  { %v1641_v23 = vadd.f32 %v1637_v34, %v1633_v62  ;;  %v1640_v15 = vadd.f32 %v1635_v61, %v1632_v63 }
0x1868   :  { %1378 = vst [vmem:[%s2317_s8] sm:$0xf] %v1377_v55 }
0x1869   :  { %v1644_v1 = vcombine.low %v1640_v15, %v1641_v23 }
0x186b   :  { %v1651_v3 = vrot.slane %v1644_v1, %v1976_v12 }
0x186d   :  { %v1658_v5 = vrot.slane %v1651_v3, %v1976_v12 }
0x1898   :  { %v1545_v6 = vpop.permute.xlu1 %1544 }
0x1899   :  { %1547 = vst.msk [vmem:[%s2322_s9] sm:$0x3] %vm246_vm2, %v1545_v6 }
0x189a   :  { %1660 = vst.msk [vmem:[%s2322_s9] sm:$0x3] %vm396_vm3, %v1658_v5 }

</bundles_post_ra>
